<compile_context>
chip_gen: v7x
topology: tpu7x:2x2x1
jax: 0.10.0
libtpu: 0.0.40
codegen_flags: <defaults>
</compile_context>

<pallas_src>
import math
import numpy as np

import jax
import jax.numpy as jnp
from jax import lax
from jax.experimental import pallas as pl
from jax.experimental.pallas import tpu as pltpu

LN_EPS = 1e-5


# --------------------------- hardware-aware sizing ---------------------------
def _num_tensorcores():
    try:
        dev = jax.devices()[0]
        n = getattr(dev, "num_cores", None)
        if not n:
            kind = str(getattr(dev, "device_kind", "")).lower()
            n = 2 if ("7x" in kind or "v7" in kind) else 1
        return max(1, min(int(n), 2))
    except Exception:
        return 1


def _vmem_capacity_bytes():
    try:
        return int(pltpu.get_tpu_info().vmem_capacity_bytes)
    except Exception:
        return 64 << 20          # conservative (v7x per-core physical VMEM)


def _choose_batch_block(B, H, W, num_cores=1, budget_bytes=8 << 20):
    """Pick how many batch elements to fuse per grid step."""
    divisors = [d for d in range(1, B + 1) if B % d == 0]

    def step_bytes(d):
        BW, A = d * W, d * H
        live = (8 * H * BW          # x / y / conv-tap / LN temporaries
                + 2 * BW * A        # xblk + its mask
                + 2 * A * BW        # vblk + its mask
                + 4 * A * A         # scores / exp / attn + segment matrix
                + BW * BW           # LN broadcast matrix P
                + 6 * H * BW)       # tiled LN gamma/beta
        return live * 4 * 2         # f32, x2 for double-buffered blocks + headroom

    fits = [d for d in divisors if step_bytes(d) <= budget_bytes] or [1]
    # Multi-TensorCore chips (v7x): keep G = B//BB >= num_cores so the
    # "parallel" grid axis actually shards across cores.
    sharded = [d for d in fits if (B // d) >= num_cores] or fits
    dense = [d for d in sharded if (d * W) % 128 == 0]
    if dense:
        return min(dense)           # smallest lane-dense block that still shards
    wide = [d for d in sharded if d * W >= 128]
    return min(wide) if wide else max(sharded)


# ----------------------------------- kernel ----------------------------------
def _make_kernel(H, W, BB):
    BW = BB * W
    A = BB * H
    lane_aligned = (BW % 128 == 0)

    def kernel(x_ref, masks_ref, p_ref, mx_ref, mv_ref, pattn_ref,
               w_ref, cv_ref, ln_ref, out_ref, attn_ref):
        x = x_ref[0]                        # (H, BW) float32
        mask_r = masks_ref[0:1, :]          # (1, BW): 0 at t==0 inside each batch
        mask_l = masks_ref[1:2, :]          # (1, BW): 0 at t==W-1 inside each batch
        P = p_ref[...]                      # (BW, BW): same-batch indicator / (H*W)

        def mm(a, b):
            return jnp.dot(a, b, preferred_element_type=jnp.float32)

        def shift_r(v):                     # v[:, t-1] per batch, zero at batch starts
            if lane_aligned:
                rolled = pltpu.roll(v, 1, axis=1)
            else:
                rolled = jnp.concatenate(
                    [jnp.zeros((H, 1), v.dtype), v[:, :BW - 1]], axis=1)
            return rolled * mask_r

        def shift_l(v):                     # v[:, t+1] per batch, zero at batch ends
            if lane_aligned:
                rolled = pltpu.roll(v, BW - 1, axis=1)
            else:
                rolled = jnp.concatenate(
                    [v[:, 1:], jnp.zeros((H, 1), v.dtype)], axis=1)
            return rolled * mask_l

        def layernorm(v, gamma, beta):      # per-batch LN over the (H, W) slab
            colsum = jnp.sum(v, axis=0, keepdims=True)        # (1, BW)
            mu = mm(colsum, P)                                 # per-batch mean, bcast
            vc = v - mu
            colsq = jnp.sum(vc * vc, axis=0, keepdims=True)
            var = mm(colsq, P)                                 # centered variance
            return vc * lax.rsqrt(var + LN_EPS) * gamma + beta

        b1 = cv_ref[:, 0:1]
        b2 = cv_ref[:, 1:2]
        pb1 = cv_ref[:, 2:3]
        pb2 = cv_ref[:, 3:4]
        dq = cv_ref[:, 4:5]                 # diag(Wq) / sqrt(W)
        dv = cv_ref[:, 5:6]                 # diag(Wv)

        # ---- DilatedCNN 1 (Conv1d k=2, pad=1, drop last col) + AddNorm ----
        # TODO(synk): dropout inside AddNorm / attention is identity (eval mode).
        y = mm(w_ref[0], shift_r(x)) + mm(w_ref[1], x) + b1
        x = layernorm(y + x, ln_ref[0], ln_ref[1])

        # ---- DilatedCNN 2 + AddNorm ----
        y = mm(w_ref[2], shift_r(x)) + mm(w_ref[3], x) + b2
        x = layernorm(y + x, ln_ref[2], ln_ref[3])

        # ---- attention, batched across BB along the lane axis --------------
        # scores[h, b*H+h'] = dq[h]*dk[h'] * <x_b[h,:], x_b[h',:]> / sqrt(W)
        # (dk and the batch-block mask are folded into mx_ref on the host)
        xblk = jnp.tile(x.T, (1, BB)) * mx_ref[...]        # (BW, A)
        s = mm(dq * x, xblk)                               # (H, A)
        # Row-max subtraction: constant within every H-wide segment, so the
        # per-batch softmax stays exact while exp never overflows.
        s = s - jnp.max(s, axis=-1, keepdims=True)
        e = jnp.exp(s)
        denom = mm(e, pattn_ref[...])                      # per-segment sums, bcast
        attn = e * pl.reciprocal(denom, approx=True)       # rows sum to 1 +/- ~1e-3
        attn_ref[0] = attn                                 # ONE packed store

        vblk = jnp.tile(dv * x, (BB, 1)) * mv_ref[...]     # (A, BW)
        y = mm(attn, vblk)                                 # (H, BW) lane-dense Y
        x = layernorm(y + x, ln_ref[4], ln_ref[5])

        # ---- pcnn1, pcnn2 (Conv1d k=3, pad=1, stride=1, dilation=1) ----------
        x = (mm(w_ref[4], shift_r(x)) + mm(w_ref[5], x)
             + mm(w_ref[6], shift_l(x)) + pb1)
        x = (mm(w_ref[7], shift_r(x)) + mm(w_ref[8], x)
             + mm(w_ref[9], shift_l(x)) + pb2)

        out_ref[0] = x

    return kernel


# ---------------------------------- wrapper -----------------------------------
def transformer_decoder_block(x, params, *, batch_block=None):
    B, H, W = x.shape
    ncores = _num_tensorcores()
    vmem_cap = _vmem_capacity_bytes()
    BB = (batch_block if batch_block is not None else
          _choose_batch_block(B, H, W, num_cores=ncores,
                              budget_bytes=max(vmem_cap // 8, 4 << 20)))
    assert B % BB == 0
    G = B // BB
    BW = BB * W
    A = BB * H

    x = x.astype(jnp.float32)
    # lane-major repack: x2[g, h, bb*W + t] = x[g*BB + bb, h, t]
    x2 = x.reshape(G, BB, H, W).transpose(0, 2, 1, 3).reshape(G, H, BW)

    # ---- host-side constants --------------------------------------------------
    t = np.arange(BW) % W
    lane_batch = np.arange(BW) // W                       # batch id per lane
    col_batch = np.arange(A) // H                         # batch id per attn column

    masks_rl = jnp.asarray(
        np.stack([(t != 0), (t != W - 1)], 0).astype(np.float32))      # (2, BW)
    P = jnp.asarray(
        (lane_batch[:, None] == lane_batch[None, :]).astype(np.float32)
        * (1.0 / float(H * W)))                                         # (BW, BW)
    blk_x = (lane_batch[:, None] == col_batch[None, :]).astype(np.float32)  # (BW, A)
    dk_row = jnp.tile(params['dk'].reshape(1, H).astype(jnp.float32), (1, BB))
    mx_dk = jnp.asarray(blk_x) * dk_row                                 # (BW, A)
    mv = jnp.asarray(
        (col_batch[:, None] == lane_batch[None, :]).astype(np.float32))  # (A, BW)
    pattn = jnp.asarray(
        (col_batch[:, None] == col_batch[None, :]).astype(np.float32))   # (A, A)

    f32 = lambda a: a.astype(jnp.float32)
    tile = lambda a: jnp.tile(f32(a), (1, BB))            # (H, W) -> (H, BW)

    wtaps = jnp.concatenate([f32(params['w1']), f32(params['w2']),
                             f32(params['pw1']), f32(params['pw2'])],
                            axis=0)                                      # (10, H, H)
    colvecs = jnp.concatenate([
        f32(params['b1']).reshape(H, 1), f32(params['b2']).reshape(H, 1),
        f32(params['pb1']).reshape(H, 1), f32(params['pb2']).reshape(H, 1),
        f32(params['dq']).reshape(H, 1) * jnp.float32(1.0 / math.sqrt(W)),
        f32(params['dv']).reshape(H, 1)], axis=1)                        # (H, 6)
    ln_slab = jnp.stack([tile(params['g1']), tile(params['be1']),
                         tile(params['g2']), tile(params['be2']),
                         tile(params['g3']), tile(params['be3'])], axis=0)  # (6,H,BW)

    consts = [masks_rl, P, mx_dk, mv, pattn, wtaps, colvecs, ln_slab]

    def full_spec(a):
        return pl.BlockSpec(a.shape, lambda g, _nd=a.ndim: (0,) * _nd)

    in_specs = ([pl.BlockSpec((1, H, BW), lambda g: (g, 0, 0))]
                + [full_spec(c) for c in consts])
    out_specs = [pl.BlockSpec((1, H, BW), lambda g: (g, 0, 0)),
                 pl.BlockSpec((1, H, A), lambda g: (g, 0, 0))]
    out_shape = [jax.ShapeDtypeStruct((G, H, BW), jnp.float32),
                 jax.ShapeDtypeStruct((G, H, A), jnp.float32)]

    fn = pl.pallas_call(
        _make_kernel(H, W, BB),
        grid=(G,),
        in_specs=in_specs,
        out_specs=out_specs,
        out_shape=out_shape,
        compiler_params=pltpu.CompilerParams(
            dimension_semantics=("parallel",),
            vmem_limit_bytes=int(min(32 << 20, max(vmem_cap // 2, 4 << 20)))),
    )
    out2, attn2 = fn(x2, *consts)

    out = out2.reshape(G, H, BB, W).transpose(0, 2, 1, 3).reshape(B, H, W)
    attn = attn2.reshape(G, H, BB, H).transpose(0, 2, 1, 3).reshape(B, H, H)
    return out, attn


# ------------------------- deterministic parameter init ----------------------
def init_params(key, H, W):
    ks = jax.random.split(key, 16)
    p = {}
    # DilatedCNN conv weights stored as (K, out_ch, in_ch) = (2, H, H)
    p['w1'] = 0.2 * jax.random.normal(ks[0], (2, H, H), jnp.float32)
    p['b1'] = 0.1 * jax.random.normal(ks[1], (H, 1), jnp.float32)
    p['w2'] = 0.2 * jax.random.normal(ks[2], (2, H, H), jnp.float32)
    p['b2'] = 0.1 * jax.random.normal(ks[3], (H, 1), jnp.float32)
    # LayerNorm affine params (PyTorch default init: ones / zeros)
    for name_g, name_b in (('g1', 'be1'), ('g2', 'be2'), ('g3', 'be3')):
        p[name_g] = jnp.ones((H, W), jnp.float32)
        p[name_b] = jnp.zeros((H, W), jnp.float32)
    # Wq/Wk/Wv are randn(H,H) but only their diagonals are used by the einsum.
    Wq = jax.random.normal(ks[4], (H, H), jnp.float32)
    Wk = jax.random.normal(ks[5], (H, H), jnp.float32)
    Wv = jax.random.normal(ks[6], (H, H), jnp.float32)
    p['dq'] = jnp.diag(Wq).reshape(H, 1)
    p['dk'] = jnp.diag(Wk).reshape(H, 1)
    p['dv'] = jnp.diag(Wv).reshape(H, 1)
    # pcnn conv weights (K=3, out, in) and biases
    p['pw1'] = 0.2 * jax.random.normal(ks[7], (3, H, H), jnp.float32)
    p['pb1'] = 0.1 * jax.random.normal(ks[8], (H, 1), jnp.float32)
    p['pw2'] = 0.2 * jax.random.normal(ks[9], (3, H, H), jnp.float32)
    p['pb2'] = 0.1 * jax.random.normal(ks[10], (H, 1), jnp.float32)
    return p


# --------------------------- pure-JAX reference -------------------------------
def _conv1d_ref(x, w, b, pad):
    # x (B,H,W), w (K,out,in), b (out,1); stride=1, dilation=1
    K = w.shape[0]
    xp = jnp.pad(x, ((0, 0), (0, 0), (pad, pad)))
    L = x.shape[-1] + 2 * pad - (K - 1)
    out = sum(jnp.einsum('oc,bcw->bow', w[j], xp[:, :, j:j + L])
              for j in range(K))
    return out + b[None]


def _ln_ref(x, g, b):
    mu = jnp.mean(x, axis=(1, 2), keepdims=True)
    var = jnp.mean((x - mu) ** 2, axis=(1, 2), keepdims=True)
    return (x - mu) / jnp.sqrt(var + LN_EPS) * g[None] + b[None]


def reference(x, p):
    B, H, W = x.shape
    y = _conv1d_ref(x, p['w1'], p['b1'], pad=1)[:, :, :-1]
    x = _ln_ref(y + x, p['g1'], p['be1'])
    y = _conv1d_ref(x, p['w2'], p['b2'], pad=1)[:, :, :-1]
    x = _ln_ref(y + x, p['g2'], p['be2'])
    q = p['dq'][None] * x
    k = p['dk'][None] * x
    v = p['dv'][None] * x
    scores = jnp.einsum('bhw,bgw->bhg', q, k) / math.sqrt(W)
    attn = jax.nn.softmax(scores, axis=-1)
    y = jnp.einsum('bhg,bgw->bhw', attn, v)
    x = _ln_ref(y + x, p['g3'], p['be3'])
    x = _conv1d_ref(x, p['pw1'], p['pb1'], pad=1)
    x = _conv1d_ref(x, p['pw2'], p['pb2'], pad=1)
    return x, attn


if __name__ == "__main__":
    B, H, W = 8, 8, 16      # idim = (H, W); Conv1d over W with H channels
    key = jax.random.PRNGKey(0)
    kx, kp = jax.random.split(key)
    x = jax.random.normal(kx, (B, H, W), jnp.float32)
    params = init_params(kp, H, W)

    out, attn = transformer_decoder_block(x, params)
    out = jax.block_until_ready(out)
    attn = jax.block_until_ready(attn)

    ref_out, ref_attn = reference(x, params)
    np.testing.assert_allclose(np.asarray(out), np.asarray(ref_out),
                               rtol=2e-2, atol=2e-2)
    np.testing.assert_allclose(np.asarray(attn), np.asarray(ref_attn),
                               rtol=2e-2, atol=2e-2)
    assert out.shape == (B, H, W) and attn.shape == (B, H, H)
    print("KERNEL_OK")
</pallas_src>

<mosaic_0001>
module attributes {stable_mosaic.version = 11 : i64} {
  func.func @kernel(%arg0: i32, %arg1: memref<1x8x128xf32, #tpu.memory_space<vmem>>, %arg2: memref<2x128xf32, #tpu.memory_space<vmem>>, %arg3: memref<128x128xf32, #tpu.memory_space<vmem>>, %arg4: memref<128x64xf32, #tpu.memory_space<vmem>>, %arg5: memref<64x128xf32, #tpu.memory_space<vmem>>, %arg6: memref<64x64xf32, #tpu.memory_space<vmem>>, %arg7: memref<10x8x8xf32, #tpu.memory_space<vmem>>, %arg8: memref<8x6xf32, #tpu.memory_space<vmem>>, %arg9: memref<6x8x128xf32, #tpu.memory_space<vmem>>, %arg10: memref<1x8x128xf32, #tpu.memory_space<vmem>>, %arg11: memref<1x8x64xf32, #tpu.memory_space<vmem>>) attributes {dimension_semantics = [#tpu.dimension_semantics<parallel>], iteration_bounds = array<i64: 1>, scalar_prefetch = 0 : i64, scratch_operands = 0 : i64, tpu.core_type = #tpu.core_type<tc>, window_params = [{transform_indices = @transform_0, window_bounds = array<i64: 1, 8, 128>}, {pipeline_mode = #tpu.pipeline_mode<synchronous>, transform_indices = @transform_1, window_bounds = array<i64: 2, 128>}, {pipeline_mode = #tpu.pipeline_mode<synchronous>, transform_indices = @transform_2, window_bounds = array<i64: 128, 128>}, {pipeline_mode = #tpu.pipeline_mode<synchronous>, transform_indices = @transform_3, window_bounds = array<i64: 128, 64>}, {pipeline_mode = #tpu.pipeline_mode<synchronous>, transform_indices = @transform_4, window_bounds = array<i64: 64, 128>}, {pipeline_mode = #tpu.pipeline_mode<synchronous>, transform_indices = @transform_5, window_bounds = array<i64: 64, 64>}, {pipeline_mode = #tpu.pipeline_mode<synchronous>, transform_indices = @transform_6, window_bounds = array<i64: 10, 8, 8>}, {pipeline_mode = #tpu.pipeline_mode<synchronous>, transform_indices = @transform_7, window_bounds = array<i64: 8, 6>}, {pipeline_mode = #tpu.pipeline_mode<synchronous>, transform_indices = @transform_8, window_bounds = array<i64: 6, 8, 128>}, {transform_indices = @transform_9, window_bounds = array<i64: 1, 8, 128>}, {transform_indices = @transform_10, window_bounds = array<i64: 1, 8, 64>}]} {
    %c0 = arith.constant 0 : index
    %c0_0 = arith.constant 0 : index
    %c0_1 = arith.constant 0 : index
    %0 = vector.load %arg1[%c0, %c0_0, %c0_1] : memref<1x8x128xf32, #tpu.memory_space<vmem>>, vector<1x8x128xf32>
    %1 = vector.shape_cast %0 : vector<1x8x128xf32> to vector<8x128xf32>
    %c0_2 = arith.constant 0 : index
    %c0_3 = arith.constant 0 : index
    %2 = vector.load %arg2[%c0_2, %c0_3] : memref<2x128xf32, #tpu.memory_space<vmem>>, vector<1x128xf32>
    %c1 = arith.constant 1 : index
    %c0_4 = arith.constant 0 : index
    %3 = vector.load %arg2[%c1, %c0_4] : memref<2x128xf32, #tpu.memory_space<vmem>>, vector<1x128xf32>
    %c0_5 = arith.constant 0 : index
    %c0_6 = arith.constant 0 : index
    %4 = vector.load %arg3[%c0_5, %c0_6] : memref<128x128xf32, #tpu.memory_space<vmem>>, vector<128x128xf32>
    %c0_7 = arith.constant 0 : index
    %c0_8 = arith.constant 0 : index
    %5 = vector.load %arg8[%c0_7, %c0_8] : memref<8x6xf32, #tpu.memory_space<vmem>>, vector<8x1xf32>
    %c0_9 = arith.constant 0 : index
    %c1_10 = arith.constant 1 : index
    %6 = vector.load %arg8[%c0_9, %c1_10] : memref<8x6xf32, #tpu.memory_space<vmem>>, vector<8x1xf32>
    %c0_11 = arith.constant 0 : index
    %c2 = arith.constant 2 : index
    %7 = vector.load %arg8[%c0_11, %c2] : memref<8x6xf32, #tpu.memory_space<vmem>>, vector<8x1xf32>
    %c0_12 = arith.constant 0 : index
    %c3 = arith.constant 3 : index
    %8 = vector.load %arg8[%c0_12, %c3] : memref<8x6xf32, #tpu.memory_space<vmem>>, vector<8x1xf32>
    %c0_13 = arith.constant 0 : index
    %c4 = arith.constant 4 : index
    %9 = vector.load %arg8[%c0_13, %c4] : memref<8x6xf32, #tpu.memory_space<vmem>>, vector<8x1xf32>
    %c0_14 = arith.constant 0 : index
    %c5 = arith.constant 5 : index
    %10 = vector.load %arg8[%c0_14, %c5] : memref<8x6xf32, #tpu.memory_space<vmem>>, vector<8x1xf32>
    %c0_15 = arith.constant 0 : index
    %c0_16 = arith.constant 0 : index
    %c0_17 = arith.constant 0 : index
    %11 = vector.load %arg7[%c0_15, %c0_16, %c0_17] : memref<10x8x8xf32, #tpu.memory_space<vmem>>, vector<1x8x8xf32>
    %12 = vector.shape_cast %11 : vector<1x8x8xf32> to vector<8x8xf32>
    %c1_i32 = arith.constant 1 : i32
    %13 = tpu.dynamic_rotate %1 by %c1_i32 dim 1 : vector<8x128xf32>, i32 -> vector<8x128xf32>
    %14 = vector.broadcast %2 : vector<1x128xf32> to vector<8x128xf32>
    %15 = arith.mulf %13, %14 : vector<8x128xf32>
    %cst = arith.constant dense<0.000000e+00> : vector<8x128xf32>
    %16 = tpu.matmul %12, %15, %cst {dimension_numbers = #tpu.dot_dimension_numbers<[1], [0], [0], [1], [0, 0, 1, 1], [], []>} : vector<8x8xf32>, vector<8x128xf32>, vector<8x128xf32> -> vector<8x128xf32>
    %c1_18 = arith.constant 1 : index
    %c0_19 = arith.constant 0 : index
    %c0_20 = arith.constant 0 : index
    %17 = vector.load %arg7[%c1_18, %c0_19, %c0_20] : memref<10x8x8xf32, #tpu.memory_space<vmem>>, vector<1x8x8xf32>
    %18 = vector.shape_cast %17 : vector<1x8x8xf32> to vector<8x8xf32>
    %cst_21 = arith.constant dense<0.000000e+00> : vector<8x128xf32>
    %19 = tpu.matmul %18, %1, %cst_21 {dimension_numbers = #tpu.dot_dimension_numbers<[1], [0], [0], [1], [0, 0, 1, 1], [], []>} : vector<8x8xf32>, vector<8x128xf32>, vector<8x128xf32> -> vector<8x128xf32>
    %20 = arith.addf %16, %19 : vector<8x128xf32>
    %21 = vector.broadcast %5 : vector<8x1xf32> to vector<8x128xf32>
    %22 = arith.addf %20, %21 : vector<8x128xf32>
    %23 = arith.addf %22, %1 : vector<8x128xf32>
    %c0_22 = arith.constant 0 : index
    %c0_23 = arith.constant 0 : index
    %c0_24 = arith.constant 0 : index
    %24 = vector.load %arg9[%c0_22, %c0_23, %c0_24] : memref<6x8x128xf32, #tpu.memory_space<vmem>>, vector<1x8x128xf32>
    %25 = vector.shape_cast %24 : vector<1x8x128xf32> to vector<8x128xf32>
    %c1_25 = arith.constant 1 : index
    %c0_26 = arith.constant 0 : index
    %c0_27 = arith.constant 0 : index
    %26 = vector.load %arg9[%c1_25, %c0_26, %c0_27] : memref<6x8x128xf32, #tpu.memory_space<vmem>>, vector<1x8x128xf32>
    %27 = vector.shape_cast %26 : vector<1x8x128xf32> to vector<8x128xf32>
    %cst_28 = arith.constant dense<0.000000e+00> : vector<128xf32>
    %28 = vector.multi_reduction <add>, %23, %cst_28 [0] : vector<8x128xf32> to vector<128xf32>
    %29 = vector.shape_cast %28 : vector<128xf32> to vector<1x128xf32>
    %cst_29 = arith.constant dense<0.000000e+00> : vector<1x128xf32>
    %30 = tpu.matmul %29, %4, %cst_29 {dimension_numbers = #tpu.dot_dimension_numbers<[1], [0], [0], [1], [0, 0, 1, 1], [], []>} : vector<1x128xf32>, vector<128x128xf32>, vector<1x128xf32> -> vector<1x128xf32>
    %31 = vector.broadcast %30 : vector<1x128xf32> to vector<8x128xf32>
    %32 = arith.subf %23, %31 : vector<8x128xf32>
    %33 = arith.mulf %32, %32 : vector<8x128xf32>
    %cst_30 = arith.constant dense<0.000000e+00> : vector<128xf32>
    %34 = vector.multi_reduction <add>, %33, %cst_30 [0] : vector<8x128xf32> to vector<128xf32>
    %35 = vector.shape_cast %34 : vector<128xf32> to vector<1x128xf32>
    %cst_31 = arith.constant dense<0.000000e+00> : vector<1x128xf32>
    %36 = tpu.matmul %35, %4, %cst_31 {dimension_numbers = #tpu.dot_dimension_numbers<[1], [0], [0], [1], [0, 0, 1, 1], [], []>} : vector<1x128xf32>, vector<128x128xf32>, vector<1x128xf32> -> vector<1x128xf32>
    %cst_32 = arith.constant 9.99999974E-6 : f32
    %37 = vector.broadcast %cst_32 : f32 to vector<1x128xf32>
    %38 = arith.addf %36, %37 : vector<1x128xf32>
    %39 = math.rsqrt %38 : vector<1x128xf32>
    %40 = vector.broadcast %39 : vector<1x128xf32> to vector<8x128xf32>
    %41 = arith.mulf %32, %40 : vector<8x128xf32>
    %42 = arith.mulf %41, %25 : vector<8x128xf32>
    %43 = arith.addf %42, %27 : vector<8x128xf32>
    %c2_33 = arith.constant 2 : index
    %c0_34 = arith.constant 0 : index
    %c0_35 = arith.constant 0 : index
    %44 = vector.load %arg7[%c2_33, %c0_34, %c0_35] : memref<10x8x8xf32, #tpu.memory_space<vmem>>, vector<1x8x8xf32>
    %45 = vector.shape_cast %44 : vector<1x8x8xf32> to vector<8x8xf32>
    %c1_i32_36 = arith.constant 1 : i32
    %46 = tpu.dynamic_rotate %43 by %c1_i32_36 dim 1 : vector<8x128xf32>, i32 -> vector<8x128xf32>
    %47 = vector.broadcast %2 : vector<1x128xf32> to vector<8x128xf32>
    %48 = arith.mulf %46, %47 : vector<8x128xf32>
    %cst_37 = arith.constant dense<0.000000e+00> : vector<8x128xf32>
    %49 = tpu.matmul %45, %48, %cst_37 {dimension_numbers = #tpu.dot_dimension_numbers<[1], [0], [0], [1], [0, 0, 1, 1], [], []>} : vector<8x8xf32>, vector<8x128xf32>, vector<8x128xf32> -> vector<8x128xf32>
    %c3_38 = arith.constant 3 : index
    %c0_39 = arith.constant 0 : index
    %c0_40 = arith.constant 0 : index
    %50 = vector.load %arg7[%c3_38, %c0_39, %c0_40] : memref<10x8x8xf32, #tpu.memory_space<vmem>>, vector<1x8x8xf32>
    %51 = vector.shape_cast %50 : vector<1x8x8xf32> to vector<8x8xf32>
    %cst_41 = arith.constant dense<0.000000e+00> : vector<8x128xf32>
    %52 = tpu.matmul %51, %43, %cst_41 {dimension_numbers = #tpu.dot_dimension_numbers<[1], [0], [0], [1], [0, 0, 1, 1], [], []>} : vector<8x8xf32>, vector<8x128xf32>, vector<8x128xf32> -> vector<8x128xf32>
    %53 = arith.addf %49, %52 : vector<8x128xf32>
    %54 = vector.broadcast %6 : vector<8x1xf32> to vector<8x128xf32>
    %55 = arith.addf %53, %54 : vector<8x128xf32>
    %56 = arith.addf %55, %43 : vector<8x128xf32>
    %c2_42 = arith.constant 2 : index
    %c0_43 = arith.constant 0 : index
    %c0_44 = arith.constant 0 : index
    %57 = vector.load %arg9[%c2_42, %c0_43, %c0_44] : memref<6x8x128xf32, #tpu.memory_space<vmem>>, vector<1x8x128xf32>
    %58 = vector.shape_cast %57 : vector<1x8x128xf32> to vector<8x128xf32>
    %c3_45 = arith.constant 3 : index
    %c0_46 = arith.constant 0 : index
    %c0_47 = arith.constant 0 : index
    %59 = vector.load %arg9[%c3_45, %c0_46, %c0_47] : memref<6x8x128xf32, #tpu.memory_space<vmem>>, vector<1x8x128xf32>
    %60 = vector.shape_cast %59 : vector<1x8x128xf32> to vector<8x128xf32>
    %cst_48 = arith.constant dense<0.000000e+00> : vector<128xf32>
    %61 = vector.multi_reduction <add>, %56, %cst_48 [0] : vector<8x128xf32> to vector<128xf32>
    %62 = vector.shape_cast %61 : vector<128xf32> to vector<1x128xf32>
    %cst_49 = arith.constant dense<0.000000e+00> : vector<1x128xf32>
    %63 = tpu.matmul %62, %4, %cst_49 {dimension_numbers = #tpu.dot_dimension_numbers<[1], [0], [0], [1], [0, 0, 1, 1], [], []>} : vector<1x128xf32>, vector<128x128xf32>, vector<1x128xf32> -> vector<1x128xf32>
    %64 = vector.broadcast %63 : vector<1x128xf32> to vector<8x128xf32>
    %65 = arith.subf %56, %64 : vector<8x128xf32>
    %66 = arith.mulf %65, %65 : vector<8x128xf32>
    %cst_50 = arith.constant dense<0.000000e+00> : vector<128xf32>
    %67 = vector.multi_reduction <add>, %66, %cst_50 [0] : vector<8x128xf32> to vector<128xf32>
    %68 = vector.shape_cast %67 : vector<128xf32> to vector<1x128xf32>
    %cst_51 = arith.constant dense<0.000000e+00> : vector<1x128xf32>
    %69 = tpu.matmul %68, %4, %cst_51 {dimension_numbers = #tpu.dot_dimension_numbers<[1], [0], [0], [1], [0, 0, 1, 1], [], []>} : vector<1x128xf32>, vector<128x128xf32>, vector<1x128xf32> -> vector<1x128xf32>
    %cst_52 = arith.constant 9.99999974E-6 : f32
    %70 = vector.broadcast %cst_52 : f32 to vector<1x128xf32>
    %71 = arith.addf %69, %70 : vector<1x128xf32>
    %72 = math.rsqrt %71 : vector<1x128xf32>
    %73 = vector.broadcast %72 : vector<1x128xf32> to vector<8x128xf32>
    %74 = arith.mulf %65, %73 : vector<8x128xf32>
    %75 = arith.mulf %74, %58 : vector<8x128xf32>
    %76 = arith.addf %75, %60 : vector<8x128xf32>
    %77 = tpu.transpose %76, [1, 0] : vector<8x128xf32> -> vector<128x8xf32>
    %78 = tpu.concatenate %77, %77, %77, %77, %77, %77, %77, %77 in 1 : vector<128x8xf32>, vector<128x8xf32>, vector<128x8xf32>, vector<128x8xf32>, vector<128x8xf32>, vector<128x8xf32>, vector<128x8xf32>, vector<128x8xf32> -> vector<128x64xf32>
    %c0_53 = arith.constant 0 : index
    %c0_54 = arith.constant 0 : index
    %79 = vector.load %arg4[%c0_53, %c0_54] : memref<128x64xf32, #tpu.memory_space<vmem>>, vector<128x64xf32>
    %80 = arith.mulf %78, %79 : vector<128x64xf32>
    %81 = vector.broadcast %9 : vector<8x1xf32> to vector<8x128xf32>
    %82 = arith.mulf %81, %76 : vector<8x128xf32>
    %cst_55 = arith.constant dense<0.000000e+00> : vector<8x64xf32>
    %83 = tpu.matmul %82, %80, %cst_55 {dimension_numbers = #tpu.dot_dimension_numbers<[1], [0], [0], [1], [0, 0, 1, 1], [], []>} : vector<8x128xf32>, vector<128x64xf32>, vector<8x64xf32> -> vector<8x64xf32>
    %cst_56 = arith.constant dense<0xFF800000> : vector<8xf32>
    %84 = vector.multi_reduction <maximumf>, %83, %cst_56 [1] : vector<8x64xf32> to vector<8xf32>
    %85 = vector.shape_cast %84 : vector<8xf32> to vector<8x1xf32>
    %86 = vector.broadcast %85 : vector<8x1xf32> to vector<8x64xf32>
    %87 = arith.subf %83, %86 : vector<8x64xf32>
    %88 = math.exp %87 : vector<8x64xf32>
    %c0_57 = arith.constant 0 : index
    %c0_58 = arith.constant 0 : index
    %89 = vector.load %arg6[%c0_57, %c0_58] : memref<64x64xf32, #tpu.memory_space<vmem>>, vector<64x64xf32>
    %cst_59 = arith.constant dense<0.000000e+00> : vector<8x64xf32>
    %90 = tpu.matmul %88, %89, %cst_59 {dimension_numbers = #tpu.dot_dimension_numbers<[1], [0], [0], [1], [0, 0, 1, 1], [], []>} : vector<8x64xf32>, vector<64x64xf32>, vector<8x64xf32> -> vector<8x64xf32>
    %91 = tpu.reciprocal %90 {approx = true} : vector<8x64xf32> -> vector<8x64xf32>
    %92 = arith.mulf %88, %91 : vector<8x64xf32>
    %c0_60 = arith.constant 0 : index
    %c0_61 = arith.constant 0 : index
    %c0_62 = arith.constant 0 : index
    %93 = vector.load %arg11[%c0_60, %c0_61, %c0_62] : memref<1x8x64xf32, #tpu.memory_space<vmem>>, vector<1x8x64xf32>
    %94 = vector.shape_cast %93 : vector<1x8x64xf32> to vector<8x64xf32>
    %95 = vector.shape_cast %92 : vector<8x64xf32> to vector<1x8x64xf32>
    tpu.vector_store %arg11[%c0_60, %c0_61, %c0_62], %95 {strides = array<i32>} : memref<1x8x64xf32, #tpu.memory_space<vmem>>, vector<1x8x64xf32>,
    %96 = vector.broadcast %10 : vector<8x1xf32> to vector<8x128xf32>
    %97 = arith.mulf %96, %76 : vector<8x128xf32>
    %98 = tpu.concatenate %97, %97, %97, %97, %97, %97, %97, %97 in 0 : vector<8x128xf32>, vector<8x128xf32>, vector<8x128xf32>, vector<8x128xf32>, vector<8x128xf32>, vector<8x128xf32>, vector<8x128xf32>, vector<8x128xf32> -> vector<64x128xf32>
    %c0_63 = arith.constant 0 : index
    %c0_64 = arith.constant 0 : index
    %99 = vector.load %arg5[%c0_63, %c0_64] : memref<64x128xf32, #tpu.memory_space<vmem>>, vector<64x128xf32>
    %100 = arith.mulf %98, %99 : vector<64x128xf32>
    %cst_65 = arith.constant dense<0.000000e+00> : vector<8x128xf32>
    %101 = tpu.matmul %92, %100, %cst_65 {dimension_numbers = #tpu.dot_dimension_numbers<[1], [0], [0], [1], [0, 0, 1, 1], [], []>} : vector<8x64xf32>, vector<64x128xf32>, vector<8x128xf32> -> vector<8x128xf32>
    %102 = arith.addf %101, %76 : vector<8x128xf32>
    %c4_66 = arith.constant 4 : index
    %c0_67 = arith.constant 0 : index
    %c0_68 = arith.constant 0 : index
    %103 = vector.load %arg9[%c4_66, %c0_67, %c0_68] : memref<6x8x128xf32, #tpu.memory_space<vmem>>, vector<1x8x128xf32>
    %104 = vector.shape_cast %103 : vector<1x8x128xf32> to vector<8x128xf32>
    %c5_69 = arith.constant 5 : index
    %c0_70 = arith.constant 0 : index
    %c0_71 = arith.constant 0 : index
    %105 = vector.load %arg9[%c5_69, %c0_70, %c0_71] : memref<6x8x128xf32, #tpu.memory_space<vmem>>, vector<1x8x128xf32>
    %106 = vector.shape_cast %105 : vector<1x8x128xf32> to vector<8x128xf32>
    %cst_72 = arith.constant dense<0.000000e+00> : vector<128xf32>
    %107 = vector.multi_reduction <add>, %102, %cst_72 [0] : vector<8x128xf32> to vector<128xf32>
    %108 = vector.shape_cast %107 : vector<128xf32> to vector<1x128xf32>
    %cst_73 = arith.constant dense<0.000000e+00> : vector<1x128xf32>
    %109 = tpu.matmul %108, %4, %cst_73 {dimension_numbers = #tpu.dot_dimension_numbers<[1], [0], [0], [1], [0, 0, 1, 1], [], []>} : vector<1x128xf32>, vector<128x128xf32>, vector<1x128xf32> -> vector<1x128xf32>
    %110 = vector.broadcast %109 : vector<1x128xf32> to vector<8x128xf32>
    %111 = arith.subf %102, %110 : vector<8x128xf32>
    %112 = arith.mulf %111, %111 : vector<8x128xf32>
    %cst_74 = arith.constant dense<0.000000e+00> : vector<128xf32>
    %113 = vector.multi_reduction <add>, %112, %cst_74 [0] : vector<8x128xf32> to vector<128xf32>
    %114 = vector.shape_cast %113 : vector<128xf32> to vector<1x128xf32>
    %cst_75 = arith.constant dense<0.000000e+00> : vector<1x128xf32>
    %115 = tpu.matmul %114, %4, %cst_75 {dimension_numbers = #tpu.dot_dimension_numbers<[1], [0], [0], [1], [0, 0, 1, 1], [], []>} : vector<1x128xf32>, vector<128x128xf32>, vector<1x128xf32> -> vector<1x128xf32>
    %cst_76 = arith.constant 9.99999974E-6 : f32
    %116 = vector.broadcast %cst_76 : f32 to vector<1x128xf32>
    %117 = arith.addf %115, %116 : vector<1x128xf32>
    %118 = math.rsqrt %117 : vector<1x128xf32>
    %119 = vector.broadcast %118 : vector<1x128xf32> to vector<8x128xf32>
    %120 = arith.mulf %111, %119 : vector<8x128xf32>
    %121 = arith.mulf %120, %104 : vector<8x128xf32>
    %122 = arith.addf %121, %106 : vector<8x128xf32>
    %c4_77 = arith.constant 4 : index
    %c0_78 = arith.constant 0 : index
    %c0_79 = arith.constant 0 : index
    %123 = vector.load %arg7[%c4_77, %c0_78, %c0_79] : memref<10x8x8xf32, #tpu.memory_space<vmem>>, vector<1x8x8xf32>
    %124 = vector.shape_cast %123 : vector<1x8x8xf32> to vector<8x8xf32>
    %c1_i32_80 = arith.constant 1 : i32
    %125 = tpu.dynamic_rotate %122 by %c1_i32_80 dim 1 : vector<8x128xf32>, i32 -> vector<8x128xf32>
    %126 = vector.broadcast %2 : vector<1x128xf32> to vector<8x128xf32>
    %127 = arith.mulf %125, %126 : vector<8x128xf32>
    %cst_81 = arith.constant dense<0.000000e+00> : vector<8x128xf32>
    %128 = tpu.matmul %124, %127, %cst_81 {dimension_numbers = #tpu.dot_dimension_numbers<[1], [0], [0], [1], [0, 0, 1, 1], [], []>} : vector<8x8xf32>, vector<8x128xf32>, vector<8x128xf32> -> vector<8x128xf32>
    %c5_82 = arith.constant 5 : index
    %c0_83 = arith.constant 0 : index
    %c0_84 = arith.constant 0 : index
    %129 = vector.load %arg7[%c5_82, %c0_83, %c0_84] : memref<10x8x8xf32, #tpu.memory_space<vmem>>, vector<1x8x8xf32>
    %130 = vector.shape_cast %129 : vector<1x8x8xf32> to vector<8x8xf32>
    %cst_85 = arith.constant dense<0.000000e+00> : vector<8x128xf32>
    %131 = tpu.matmul %130, %122, %cst_85 {dimension_numbers = #tpu.dot_dimension_numbers<[1], [0], [0], [1], [0, 0, 1, 1], [], []>} : vector<8x8xf32>, vector<8x128xf32>, vector<8x128xf32> -> vector<8x128xf32>
    %132 = arith.addf %128, %131 : vector<8x128xf32>
    %c6 = arith.constant 6 : index
    %c0_86 = arith.constant 0 : index
    %c0_87 = arith.constant 0 : index
    %133 = vector.load %arg7[%c6, %c0_86, %c0_87] : memref<10x8x8xf32, #tpu.memory_space<vmem>>, vector<1x8x8xf32>
    %134 = vector.shape_cast %133 : vector<1x8x8xf32> to vector<8x8xf32>
    %c127_i32 = arith.constant 127 : i32
    %135 = tpu.dynamic_rotate %122 by %c127_i32 dim 1 : vector<8x128xf32>, i32 -> vector<8x128xf32>
    %136 = vector.broadcast %3 : vector<1x128xf32> to vector<8x128xf32>
    %137 = arith.mulf %135, %136 : vector<8x128xf32>
    %cst_88 = arith.constant dense<0.000000e+00> : vector<8x128xf32>
    %138 = tpu.matmul %134, %137, %cst_88 {dimension_numbers = #tpu.dot_dimension_numbers<[1], [0], [0], [1], [0, 0, 1, 1], [], []>} : vector<8x8xf32>, vector<8x128xf32>, vector<8x128xf32> -> vector<8x128xf32>
    %139 = arith.addf %132, %138 : vector<8x128xf32>
    %140 = vector.broadcast %7 : vector<8x1xf32> to vector<8x128xf32>
    %141 = arith.addf %139, %140 : vector<8x128xf32>
    %c7 = arith.constant 7 : index
    %c0_89 = arith.constant 0 : index
    %c0_90 = arith.constant 0 : index
    %142 = vector.load %arg7[%c7, %c0_89, %c0_90] : memref<10x8x8xf32, #tpu.memory_space<vmem>>, vector<1x8x8xf32>
    %143 = vector.shape_cast %142 : vector<1x8x8xf32> to vector<8x8xf32>
    %c1_i32_91 = arith.constant 1 : i32
    %144 = tpu.dynamic_rotate %141 by %c1_i32_91 dim 1 : vector<8x128xf32>, i32 -> vector<8x128xf32>
    %145 = vector.broadcast %2 : vector<1x128xf32> to vector<8x128xf32>
    %146 = arith.mulf %144, %145 : vector<8x128xf32>
    %cst_92 = arith.constant dense<0.000000e+00> : vector<8x128xf32>
    %147 = tpu.matmul %143, %146, %cst_92 {dimension_numbers = #tpu.dot_dimension_numbers<[1], [0], [0], [1], [0, 0, 1, 1], [], []>} : vector<8x8xf32>, vector<8x128xf32>, vector<8x128xf32> -> vector<8x128xf32>
    %c8 = arith.constant 8 : index
    %c0_93 = arith.constant 0 : index
    %c0_94 = arith.constant 0 : index
    %148 = vector.load %arg7[%c8, %c0_93, %c0_94] : memref<10x8x8xf32, #tpu.memory_space<vmem>>, vector<1x8x8xf32>
    %149 = vector.shape_cast %148 : vector<1x8x8xf32> to vector<8x8xf32>
    %cst_95 = arith.constant dense<0.000000e+00> : vector<8x128xf32>
    %150 = tpu.matmul %149, %141, %cst_95 {dimension_numbers = #tpu.dot_dimension_numbers<[1], [0], [0], [1], [0, 0, 1, 1], [], []>} : vector<8x8xf32>, vector<8x128xf32>, vector<8x128xf32> -> vector<8x128xf32>
    %151 = arith.addf %147, %150 : vector<8x128xf32>
    %c9 = arith.constant 9 : index
    %c0_96 = arith.constant 0 : index
    %c0_97 = arith.constant 0 : index
    %152 = vector.load %arg7[%c9, %c0_96, %c0_97] : memref<10x8x8xf32, #tpu.memory_space<vmem>>, vector<1x8x8xf32>
    %153 = vector.shape_cast %152 : vector<1x8x8xf32> to vector<8x8xf32>
    %c127_i32_98 = arith.constant 127 : i32
    %154 = tpu.dynamic_rotate %141 by %c127_i32_98 dim 1 : vector<8x128xf32>, i32 -> vector<8x128xf32>
    %155 = vector.broadcast %3 : vector<1x128xf32> to vector<8x128xf32>
    %156 = arith.mulf %154, %155 : vector<8x128xf32>
    %cst_99 = arith.constant dense<0.000000e+00> : vector<8x128xf32>
    %157 = tpu.matmul %153, %156, %cst_99 {dimension_numbers = #tpu.dot_dimension_numbers<[1], [0], [0], [1], [0, 0, 1, 1], [], []>} : vector<8x8xf32>, vector<8x128xf32>, vector<8x128xf32> -> vector<8x128xf32>
    %158 = arith.addf %151, %157 : vector<8x128xf32>
    %159 = vector.broadcast %8 : vector<8x1xf32> to vector<8x128xf32>
    %160 = arith.addf %158, %159 : vector<8x128xf32>
    %c0_100 = arith.constant 0 : index
    %c0_101 = arith.constant 0 : index
    %c0_102 = arith.constant 0 : index
    %161 = vector.load %arg10[%c0_100, %c0_101, %c0_102] : memref<1x8x128xf32, #tpu.memory_space<vmem>>, vector<1x8x128xf32>
    %162 = vector.shape_cast %161 : vector<1x8x128xf32> to vector<8x128xf32>
    %163 = vector.shape_cast %160 : vector<8x128xf32> to vector<1x8x128xf32>
    tpu.vector_store %arg10[%c0_100, %c0_101, %c0_102], %163 {strides = array<i32>} : memref<1x8x128xf32, #tpu.memory_space<vmem>>, vector<1x8x128xf32>,
    return
  }
  func.func @transform_0(%arg0: i32) -> (i32, i32, i32) {
    %c0_i32 = arith.constant 0 : i32
    %c0_i32_0 = arith.constant 0 : i32
    %c0_i32_1 = arith.constant 0 : i32
    return %arg0, %c0_i32, %c0_i32_0 : i32, i32, i32
  }
  func.func @transform_1(%arg0: i32) -> (i32, i32) {
    %c0_i32 = arith.constant 0 : i32
    %c0_i32_0 = arith.constant 0 : i32
    %c0_i32_1 = arith.constant 0 : i32
    return %c0_i32, %c0_i32_0 : i32, i32
  }
  func.func @transform_2(%arg0: i32) -> (i32, i32) {
    %c0_i32 = arith.constant 0 : i32
    %c0_i32_0 = arith.constant 0 : i32
    %c0_i32_1 = arith.constant 0 : i32
    return %c0_i32, %c0_i32_0 : i32, i32
  }
  func.func @transform_3(%arg0: i32) -> (i32, i32) {
    %c0_i32 = arith.constant 0 : i32
    %c0_i32_0 = arith.constant 0 : i32
    %c0_i32_1 = arith.constant 0 : i32
    return %c0_i32, %c0_i32_0 : i32, i32
  }
  func.func @transform_4(%arg0: i32) -> (i32, i32) {
    %c0_i32 = arith.constant 0 : i32
    %c0_i32_0 = arith.constant 0 : i32
    %c0_i32_1 = arith.constant 0 : i32
    return %c0_i32, %c0_i32_0 : i32, i32
  }
  func.func @transform_5(%arg0: i32) -> (i32, i32) {
    %c0_i32 = arith.constant 0 : i32
    %c0_i32_0 = arith.constant 0 : i32
    %c0_i32_1 = arith.constant 0 : i32
    return %c0_i32, %c0_i32_0 : i32, i32
  }
  func.func @transform_6(%arg0: i32) -> (i32, i32, i32) {
    %c0_i32 = arith.constant 0 : i32
    %c0_i32_0 = arith.constant 0 : i32
    %c0_i32_1 = arith.constant 0 : i32
    %c0_i32_2 = arith.constant 0 : i32
    return %c0_i32, %c0_i32_0, %c0_i32_1 : i32, i32, i32
  }
  func.func @transform_7(%arg0: i32) -> (i32, i32) {
    %c0_i32 = arith.constant 0 : i32
    %c0_i32_0 = arith.constant 0 : i32
    %c0_i32_1 = arith.constant 0 : i32
    return %c0_i32, %c0_i32_0 : i32, i32
  }
  func.func @transform_8(%arg0: i32) -> (i32, i32, i32) {
    %c0_i32 = arith.constant 0 : i32
    %c0_i32_0 = arith.constant 0 : i32
    %c0_i32_1 = arith.constant 0 : i32
    %c0_i32_2 = arith.constant 0 : i32
    return %c0_i32, %c0_i32_0, %c0_i32_1 : i32, i32, i32
  }
  func.func @transform_9(%arg0: i32) -> (i32, i32, i32) {
    %c0_i32 = arith.constant 0 : i32
    %c0_i32_0 = arith.constant 0 : i32
    %c0_i32_1 = arith.constant 0 : i32
    return %arg0, %c0_i32, %c0_i32_0 : i32, i32, i32
  }
  func.func @transform_10(%arg0: i32) -> (i32, i32, i32) {
    %c0_i32 = arith.constant 0 : i32
    %c0_i32_0 = arith.constant 0 : i32
    %c0_i32_1 = arith.constant 0 : i32
    return %arg0, %c0_i32, %c0_i32_0 : i32, i32, i32
  }
}

</mosaic_0001>

<bundles_post_ra>
// kernel: tpu_custom_call.1
= control target key start
LH: loop header
LB: loop body
LE: loop exit
PB: predicated region body
PF: predicated region fallthrough
CT: control target
= control target key end

     0   :  { %16 = vsyncpa [#allocation3], 0  ;;  %s4009_s0 = inlined_call_operand.vmem [shape: f32[1,8,128], index: 0, kind: input, shape index: {}]   ;;  %s4010_s1 = inlined_call_operand.vmem [shape: f32[2,128], index: 1, kind: input, shape index: {}]   ;;  %s4011_s2 = inlined_call_operand.vmem [shape: f32[128,128], index: 2, kind: input, shape index: {}]   ;;  %s4012_s3 = inlined_call_operand.vmem [shape: f32[128,64], index: 3, kind: input, shape index: {}]   ;;  %s4013_s4 = inlined_call_operand.vmem [shape: f32[64,128], index: 4, kind: input, shape index: {}]   ;;  %s4014_s5 = inlined_call_operand.vmem [shape: f32[64,64], index: 5, kind: input, shape index: {}]   ;;  %s4015_s6 = inlined_call_operand.vmem [shape: f32[10,8,8], index: 6, kind: input, shape index: {}]   ;;  %s4016_s7 = inlined_call_operand.vmem [shape: f32[8,6], index: 7, kind: input, shape index: {}]   ;;  %s4017_s8 = inlined_call_operand.hbm [shape: f32[6,8,128], index: 8, kind: input, shape index: {}]   ;;  %s4018_s9 = inlined_call_operand.hbm [shape: f32[1,8,128], index: 9, kind: output, shape index: {0}]   ;;  %s4019_s10 = inlined_call_operand.hbm [shape: f32[1,8,64], index: 10, kind: output, shape index: {1}]  }
   0x1   :  { %17 = vsyncpa [#allocation4], 0 }
   0x2   :  { %18 = vsyncpa [#allocation7], 0  ;;  %s3022_s13 = smov [#allocation2]   ;;  %s2950_s17 = scalar_lea.hbm %s4017_s8, 768 }
   0x3   :  { %s40_s14 = sshll.u32 %s3022_s13, 4  ;;  %p2951_p0 = scmp.ne.s32.totalorder %s4017_s8, %s2950_s17  ;;  %s41_s14 = int_to_ptr.vmem [resolvable:$true] %s40_s14 }
   0x4   :  { %p2954_p1 = scmp.lt.u32.totalorder %s2950_s17, %s4017_s8 }
   0x6   :  { %p2956_p2 = pnand %p2954_p1, %p2951_p0 }
   0x8   :  { %2959 = shalt.err (!%p2956_p2)
}
   0x9   :  { %s2960_s22 = scalar_lea.vmem %s41_s14, 768  ;;  %p2965_p4 = scmp.lt.s32.totalorder %s41_s14, %s41_s14 }
   0xa   :  { %p2961_p3 = scmp.ne.s32.totalorder %s41_s14, %s2960_s22  ;;  %p2966_p5 = scmp.lt.s32.totalorder %s2960_s22, %s2960_s22 }
   0xc   :  { %p2967_p6 = por %p2966_p5, %p2965_p4 }
   0xe   :  { %p2968_p7 = pnand %p2967_p6, %p2961_p3 }
  0x10   :  { %2971 = shalt.err (!%p2968_p7)
}
  0x11   :  { %s3023_s23 = smov 128   ;;  %s3024_s24 = smov 8  }
  0x12   :  { %46 = dma.hbm_to_vmem [thread:$0]  %s4017_s8, 768, %s41_s14, [#allocation3], %s3023_s23, %s3023_s23, %s3024_s24  }
  0x13   :  { %3016 = dma.done.wait [#allocation3], 768  }
  0x14   :  { %3017 = vsyncadd [#allocation3], 4294966528  ;;  %v3025_v0 = vmov 0.0   ;;  %vm3026_vm0 = vmmov 0   ;;  %v3027_v1 = vmov 0   ;;  %vm80_vm1 = vcmask 64512  }
  0x15   :  { %2384 = vmatprep.subr.mxu0 %v3025_v0  ;;  %2386 = vmatprep.mubr.msk.f32.mxu0 %vm3026_vm0, %v3025_v0  ;;  %v3121_v2 = vld [vmem:[%s4009_s0] sm:$0xff]  ;;  %v2205_v3 = vld [vmem:[%s4015_s6 + $0x8] sm:$0xff]  ;;  %s3028_s30 = smov 1   ;;  %v3029_v6 = vmov 0.0|0.0   ;;  %v55_v8 = vld [vmem:[%s4011_s2 + $0x10] sm:$0xff]  ;;  %v313_v48 = vlaneseq  ;;  %s3031_s12 = smov 40  }
  0x16   :  { %2389 = vmatprep.subr.mxu1 %v3025_v0  ;;  %2391 = vmatprep.mubr.msk.f32.mxu1 %vm3026_vm0, %v3025_v0  ;;  %v3132_v4 = vld [vmem:[%s4016_s7] sm:$0xff]  ;;  %v54_v7 = vld [vmem:[%s4011_s2 + $0x8] sm:$0xff]  ;;  %v56_v9 = vld [vmem:[%s4011_s2 + $0x18] sm:$0xff]  ;;  %s3032_s13 = smov 16   ;;  %s3033_s14 = smov 24   ;;  %vm1132_vm2 = vcmask 130048  }
  0x17   :  { %2931 = vset.pattern.permute.xlu0 %v3027_v1  ;;  %2385 = vmatpush3.msra.mxu0 %v3121_v2  ;;  %v53_v5 = vld [vmem:[%s4011_s2] sm:$0xff]  ;;  %v3154_v11 = vpack.c.bf16 %v56_v9, %v55_v8  ;;  %v58_v13 = vld [vmem:[%s4011_s2 + $0x28] sm:$0xff]  ;;  %v59_v19 = vld [vmem:[%s4011_s2 + $0x30] sm:$0xff]  ;;  %v314_v49 = vshrl.u32 %v313_v48, 7  ;;  %s3034_s0 = smov 32   ;;  %s3035_s15 = smov 56  }
  0x18   :  { %71 = vrot.lane.b32.xlu0 %v3121_v2, %s3028_s30  ;;  %2387 = vmatmul.mubr.msk.f32.vlgmr.msra.gmra.mrb[0].mxu0 %vm80_vm1, %v2205_v3  ;;  %v3148_v10 = vpack.c.bf16 %v54_v7, %v53_v5  ;;  %v57_v12 = vld [vmem:[%s4011_s2 + $0x20] sm:$0xff]  ;;  %v60_v20 = vld [vmem:[%s4011_s2 + $0x38] sm:$0xff]  ;;  %v62_v23 = vld [vmem:[%s4011_s2 + $0x48] sm:$0xff]  ;;  %v3030_v3 = vmov 1   ;;  %s3036_s16 = smov 48   ;;  %vm1149_vm3 = vcmask 195584  }
  0x19   :  { %2717 = vmatprep.subr.bf16.mxu0 %v3029_v6  ;;  %2426 = vmatprep.mubr.msk.f32.mxu0 %vm3026_vm0, %v3025_v0  ;;  %v3164_v14 = vpack.c.bf16 %v58_v13, %v57_v12  ;;  %v3172_v15 = vld [vmem:[%s4010_s1] ss:$0 sm:$0xff]  ;;  %v3194_v21 = vpack.c.bf16 %v60_v20, %v59_v19  ;;  %v63_v25 = vld [vmem:[%s4011_s2 + $0x50] sm:$0xff]  ;;  %v64_v26 = vld [vmem:[%s4011_s2 + $0x58] sm:$0xff]  ;;  %v3251_v50 = vsub.s32 0, %v314_v49  ;;  %vm1166_vm4 = vcmask 261120  }
  0x1a   :  { %2719 = vmatpush3.bf16.msra.mxu0 %v3148_v10  ;;  %v70_v18 = vld [vmem:[%s4015_s6] sm:$0xff]  ;;  %v3218_v27 = vpack.c.bf16 %v64_v26, %v63_v25  ;;  %v66_v29 = vld [vmem:[%s4011_s2 + $0x68] sm:$0xff]  ;;  %v67_v32 = vld [vmem:[%s4011_s2 + $0x70] sm:$0xff]  ;;  %2932 = vset.pattern.permute.xlu1 %v3030_v3  ;;  %vm1183_vm5 = vcmask 326656   ;;  %vm1200_vm6 = vcmask 392192   ;;  %vm1217_vm7 = vcmask 457728  }
  0x1b   :  { %2720 = vmatprep.subr.bf16.mxu0 %v3029_v6  ;;  %v61_v22 = vld [vmem:[%s4011_s2 + $0x40] sm:$0xff]  ;;  %v68_v33 = vld [vmem:[%s4011_s2 + $0x78] sm:$0xff]  ;;  %v236_v9 = vld [vmem:[#allocation2 + $0x8] sm:$0xff]  ;;  %vm1341_vm8 = vcmask 523264   ;;  %s3042_s27 = smov [#allocation6]  }
  0x1c   :  { %229 = vperm.xlu0 %2931, %v3132_v4   ;;  %v3206_v24 = vpack.c.bf16 %v62_v23, %v61_v22  ;;  %v65_v28 = vld [vmem:[%s4011_s2 + $0x60] sm:$0xff]  ;;  %v3239_v35 = vpack.c.bf16 %v68_v33, %v67_v32  ;;  %v2208_v19 = vld [vmem:[%s4015_s6 + $0x10] sm:$0xff] }
  0x1d   :  { %v3230_v30 = vpack.c.bf16 %v66_v29, %v65_v28  ;;  %v234_v7 = vld [vmem:[#allocation2] sm:$0xff] }
  0x1e   :  { %2722 = vmatpush3.bf16.msra.mxu0 %v3154_v11 }
  0x1f   :  { %2723 = vmatprep.subr.bf16.mxu0 %v3029_v6 }
  0x22   :  { %2725 = vmatpush3.bf16.msra.mxu0 %v3164_v14 }
  0x23   :  { %2726 = vmatprep.subr.bf16.mxu0 %v3029_v6 }
  0x26   :  { %2728 = vmatpush3.bf16.msra.mxu0 %v3194_v21 }
  0x27   :  { %2729 = vmatprep.subr.bf16.mxu0 %v3029_v6 }
  0x2a   :  { %2731 = vmatpush3.bf16.msra.mxu0 %v3206_v24 }
  0x2b   :  { %2732 = vmatprep.subr.bf16.mxu0 %v3029_v6 }
  0x2e   :  { %2734 = vmatpush3.bf16.msra.mxu0 %v3218_v27 }
  0x2f   :  { %2735 = vmatprep.subr.bf16.mxu0 %v3029_v6 }
  0x32   :  { %2737 = vmatpush3.bf16.msra.mxu0 %v3230_v30 }
  0x33   :  { %2738 = vmatprep.subr.bf16.mxu0 %v3029_v6 }
  0x36   :  { %2740 = vmatpush3.bf16.msra.mxu0 %v3239_v35 }
  0x37   :  { %2464 = vmatprep.subr.mxu0 %v3025_v0 }
  0x8a   :  { %v72_v16 = vpop.permute.xlu0 %71 }
  0x8b   :  { %v77_v17 = vmul.f32 %v3172_v15, %v72_v16  ;;  %v2209_v16 = vld [vmem:[%s4015_s6 + $0x18] sm:$0xff] }
  0x8d   :  { %2390 = vmatpush3.msra.mxu1 %v77_v17 }
  0x8e   :  { %2392 = vmatmul.mubr.msk.f32.vlgmr.msra.gmra.mrb[0].mxu1 %vm80_vm1, %v70_v18  ;;  %2741 = vmatprep.subr.bf16.mxu1 %v3029_v6 }
  0x8f   :  { %2743 = vmatpush3.bf16.msra.mxu1 %v3148_v10  ;;  %2461 = vmatprep.mubr.msk.f32.mxu1 %vm3026_vm0, %v3025_v0 }
  0x90   :  { %2744 = vmatprep.subr.bf16.mxu1 %v3029_v6 }
  0x93   :  { %2746 = vmatpush3.bf16.msra.mxu1 %v3154_v11 }
  0x94   :  { %2747 = vmatprep.subr.bf16.mxu1 %v3029_v6 }
  0x97   :  { %2749 = vmatpush3.bf16.msra.mxu1 %v3164_v14 }
  0x98   :  { %2750 = vmatprep.subr.bf16.mxu1 %v3029_v6 }
  0x9b   :  { %2752 = vmatpush3.bf16.msra.mxu1 %v3194_v21  ;;  %v230_v37 = vpop.permute.xlu0 %229 }
  0x9c   :  { %2753 = vmatprep.subr.bf16.mxu1 %v3029_v6 }
  0x9f   :  { %2755 = vmatpush3.bf16.msra.mxu1 %v3206_v24 }
  0xa0   :  { %2756 = vmatprep.subr.bf16.mxu1 %v3029_v6 }
  0xa3   :  { %2758 = vmatpush3.bf16.msra.mxu1 %v3218_v27 }
  0xa4   :  { %2759 = vmatprep.subr.bf16.mxu1 %v3029_v6 }
  0xa7   :  { %2761 = vmatpush3.bf16.msra.mxu1 %v3230_v30 }
  0xa8   :  { %2762 = vmatprep.subr.bf16.mxu1 %v3029_v6 }
  0xab   :  { %2764 = vmatpush3.bf16.msra.mxu1 %v3239_v35 }
  0xac   :  { %2469 = vmatprep.subr.mxu1 %v3025_v0 }
  0xeb   :  { %v150_v31 = vpop.f32.mrb[0].mxu0 }
  0xec   :  { %v2388_v34 = vpop.f32.mrb[1].mxu0 }
 0x161   :  { %v223_v36 = vpop.f32.mrb[0].mxu1 }
 0x162   :  { %v224_v38 = vadd.f32 %v223_v36, %v150_v31  ;;  %v2393_v39 = vpop.f32.mrb[1].mxu1 }
 0x164   :  { %v232_v40 = vadd.f32 %v230_v37, %v224_v38 }
 0x166   :  { %v233_v41 = vadd.f32 %v232_v40, %v3121_v2 }
 0x168   :  { %v237_v42 = vrot.slane %v233_v41, 4 }
 0x16a   :  { %v238_v43 = vadd.f32 %v237_v42, %v233_v41 }
 0x16c   :  { %v239_v44 = vrot.slane %v238_v43, 2 }
 0x16e   :  { %v240_v45 = vadd.f32 %v239_v44, %v238_v43 }
 0x170   :  { %v241_v46 = vrot.slane %v240_v45, 1 }
 0x172   :  { %v242_v47 = vadd.f32 %v241_v46, %v240_v45 }
 0x174   :  { %2427 = vmatmul.mubr.f32.vlgmr.msra.gmra.mrb[2].mxu0 %v242_v47 }
 0x175   :  { %2466 = vmatprep.mubr.msk.f32.mxu0 %vm3026_vm0, %v3025_v0 }
 0x247   :  { %v309_v51 = vpop.f32.mrb[2].mxu0 }
 0x248   :  { %v316_v52 = vrot.slane %v309_v51, %v3251_v50  ;;  %v2428_v53 = vpop.f32.mrb[3].mxu0 }
 0x24a   :  { %v317_v54 = vsub.f32 %v233_v41, %v316_v52 }
 0x24c   :  { %v318_v55 = vmul.f32 %v317_v54, %v317_v54 }
 0x24e   :  { %v319_v56 = vrot.slane %v318_v55, 4 }
 0x250   :  { %v320_v57 = vadd.f32 %v319_v56, %v318_v55  ;;  %v563_v55 = vld [vmem:[#allocation2 + $0x10] sm:$0xff] }
 0x252   :  { %v321_v58 = vrot.slane %v320_v57, 2 }
 0x254   :  { %v322_v59 = vadd.f32 %v321_v58, %v320_v57  ;;  %v565_v57 = vld [vmem:[#allocation2 + $0x18] sm:$0xff] }
 0x256   :  { %v323_v60 = vrot.slane %v322_v59, 1 }
 0x258   :  { %v324_v61 = vadd.f32 %v323_v60, %v322_v59 }
 0x25a   :  { %2462 = vmatmul.mubr.f32.vlgmr.msra.gmra.mrb[2].mxu1 %v324_v61 }
 0x25b   :  { %2471 = vmatprep.mubr.msk.f32.mxu1 %vm3026_vm0, %v3025_v0 }
 0x32d   :  { %v391_v62 = vpop.f32.mrb[2].mxu1 }
 0x32e   :  { %v392_v63 = vadd.f32 1e-05, %v391_v62  ;;  %v2463_v1 = vpop.f32.mrb[3].mxu1 }
 0x330   :  { %2938 = vrsqrt.f32 %v392_v63 }
 0x33a   :  { %v2939_v2 = vpop.eup %2938 }
 0x33b   :  { %v399_v5 = vrot.slane %v2939_v2, %v3251_v50 }
 0x33d   :  { %v400_v8 = vmul.f32 %v399_v5, %v317_v54 }
 0x33f   :  { %v401_v12 = vmul.f32 %v400_v8, %v234_v7  ;;  %v3037_v7 = vmov 5  }
 0x341   :  { %v402_v13 = vadd.f32 %v401_v12, %v236_v9 }
 0x343   :  { %405 = vrot.lane.b32.xlu1 %v402_v13, %s3028_s30  ;;  %2465 = vmatpush3.msra.mxu0 %v402_v13 }
 0x344   :  { %2467 = vmatmul.mubr.msk.f32.vlgmr.msra.gmra.mrb[4].mxu0 %vm80_vm1, %v2209_v16  ;;  %2765 = vmatprep.subr.bf16.mxu0 %v3029_v6 }
 0x345   :  { %2767 = vmatpush3.bf16.msra.mxu0 %v3148_v10  ;;  %2506 = vmatprep.mubr.msk.f32.mxu0 %vm3026_vm0, %v3025_v0 }
 0x346   :  { %2768 = vmatprep.subr.bf16.mxu0 %v3029_v6 }
 0x347   :  { %557 = vperm.xlu1 %2932, %v3132_v4  }
 0x349   :  { %2770 = vmatpush3.bf16.msra.mxu0 %v3154_v11 }
 0x34a   :  { %2771 = vmatprep.subr.bf16.mxu0 %v3029_v6 }
 0x34d   :  { %2773 = vmatpush3.bf16.msra.mxu0 %v3164_v14 }
 0x34e   :  { %2774 = vmatprep.subr.bf16.mxu0 %v3029_v6 }
 0x351   :  { %2776 = vmatpush3.bf16.msra.mxu0 %v3194_v21 }
 0x352   :  { %2777 = vmatprep.subr.bf16.mxu0 %v3029_v6 }
 0x355   :  { %2779 = vmatpush3.bf16.msra.mxu0 %v3206_v24 }
 0x356   :  { %2780 = vmatprep.subr.bf16.mxu0 %v3029_v6 }
 0x359   :  { %2782 = vmatpush3.bf16.msra.mxu0 %v3218_v27 }
 0x35a   :  { %2783 = vmatprep.subr.bf16.mxu0 %v3029_v6 }
 0x35d   :  { %2785 = vmatpush3.bf16.msra.mxu0 %v3230_v30 }
 0x35e   :  { %2786 = vmatprep.subr.bf16.mxu0 %v3029_v6 }
 0x361   :  { %2788 = vmatpush3.bf16.msra.mxu0 %v3239_v35 }
 0x362   :  { %2813 = vmatprep.subr.bf16.mxu0 %v3029_v6 }
 0x3b5   :  { %v406_v17 = vpop.permute.xlu1 %405 }
 0x3b6   :  { %v407_v18 = vmul.f32 %v3172_v15, %v406_v17 }
 0x3b8   :  { %2470 = vmatpush3.msra.mxu1 %v407_v18 }
 0x3b9   :  { %2472 = vmatmul.mubr.msk.f32.vlgmr.msra.gmra.mrb[4].mxu1 %vm80_vm1, %v2208_v19  ;;  %2789 = vmatprep.subr.bf16.mxu1 %v3029_v6 }
 0x3ba   :  { %2791 = vmatpush3.bf16.msra.mxu1 %v3148_v10  ;;  %2541 = vmatprep.mubr.msk.f32.mxu1 %vm3026_vm0, %v3025_v0 }
 0x3bb   :  { %2792 = vmatprep.subr.bf16.mxu1 %v3029_v6 }
 0x3be   :  { %2794 = vmatpush3.bf16.msra.mxu1 %v3154_v11 }
 0x3bf   :  { %2795 = vmatprep.subr.bf16.mxu1 %v3029_v6 }
 0x3c2   :  { %2797 = vmatpush3.bf16.msra.mxu1 %v3164_v14 }
 0x3c3   :  { %2798 = vmatprep.subr.bf16.mxu1 %v3029_v6 }
 0x3c6   :  { %2800 = vmatpush3.bf16.msra.mxu1 %v3194_v21  ;;  %v558_v23 = vpop.permute.xlu1 %557 }
 0x3c7   :  { %2801 = vmatprep.subr.bf16.mxu1 %v3029_v6 }
 0x3ca   :  { %2803 = vmatpush3.bf16.msra.mxu1 %v3206_v24 }
 0x3cb   :  { %2804 = vmatprep.subr.bf16.mxu1 %v3029_v6 }
 0x3ce   :  { %2806 = vmatpush3.bf16.msra.mxu1 %v3218_v27 }
 0x3cf   :  { %2807 = vmatprep.subr.bf16.mxu1 %v3029_v6 }
 0x3d2   :  { %2809 = vmatpush3.bf16.msra.mxu1 %v3230_v30 }
 0x3d3   :  { %2810 = vmatprep.subr.bf16.mxu1 %v3029_v6 }
 0x3d6   :  { %2812 = vmatpush3.bf16.msra.mxu1 %v3239_v35 }
 0x3d7   :  { %2837 = vmatprep.subr.bf16.mxu1 %v3029_v6 }
 0x417   :  { %v479_v15 = vpop.f32.mrb[4].mxu0 }
 0x418   :  { %v2468_v20 = vpop.f32.mrb[5].mxu0 }
 0x48c   :  { %v552_v22 = vpop.f32.mrb[4].mxu1 }
 0x48d   :  { %v553_v25 = vadd.f32 %v552_v22, %v479_v15  ;;  %v2473_v26 = vpop.f32.mrb[5].mxu1 }
 0x48f   :  { %v560_v28 = vadd.f32 %v558_v23, %v553_v25 }
 0x491   :  { %v561_v29 = vadd.f32 %v560_v28, %v402_v13 }
 0x493   :  { %v566_v31 = vrot.slane %v561_v29, 4 }
 0x495   :  { %v567_v32 = vadd.f32 %v566_v31, %v561_v29 }
 0x497   :  { %v568_v33 = vrot.slane %v567_v32, 2 }
 0x499   :  { %v569_v34 = vadd.f32 %v568_v33, %v567_v32 }
 0x49b   :  { %v570_v36 = vrot.slane %v569_v34, 1 }
 0x49d   :  { %v571_v37 = vadd.f32 %v570_v36, %v569_v34 }
 0x49f   :  { %2507 = vmatmul.mubr.f32.vlgmr.msra.gmra.mrb[6].mxu0 %v571_v37 }
 0x4a0   :  { %2576 = vmatprep.mubr.msk.f32.mxu0 %vm3026_vm0, %v3025_v0 }
 0x572   :  { %v638_v38 = vpop.f32.mrb[6].mxu0 }
 0x573   :  { %v645_v39 = vrot.slane %v638_v38, %v3251_v50  ;;  %v2508_v40 = vpop.f32.mrb[7].mxu0  ;;  %v3038_v38 = vmov 4  }
 0x574   :  { %2933 = vset.pattern.permute.xlu0 %v3038_v38 }
 0x575   :  { %v646_v41 = vsub.f32 %v561_v29, %v645_v39 }
 0x577   :  { %v647_v42 = vmul.f32 %v646_v41, %v646_v41 }
 0x579   :  { %v648_v43 = vrot.slane %v647_v42, 4 }
 0x57b   :  { %v649_v44 = vadd.f32 %v648_v43, %v647_v42 }
 0x57d   :  { %v650_v45 = vrot.slane %v649_v44, 2 }
 0x57f   :  { %v651_v46 = vadd.f32 %v650_v45, %v649_v44 }
 0x581   :  { %v652_v47 = vrot.slane %v651_v46, 1 }
 0x583   :  { %v653_v48 = vadd.f32 %v652_v47, %v651_v46 }
 0x585   :  { %2542 = vmatmul.mubr.f32.vlgmr.msra.gmra.mrb[6].mxu1 %v653_v48 }
 0x586   :  { %2595 = vmatprep.mubr.msk.f32.mxu1 %vm3026_vm0, %v3025_v0 }
 0x658   :  { %v720_v49 = vpop.f32.mrb[6].mxu1 }
 0x659   :  { %v721_v51 = vadd.f32 1e-05, %v720_v49  ;;  %v2543_v52 = vpop.f32.mrb[7].mxu1 }
 0x65a   :  { %v1234_v52 = vld [vmem:[%s4012_s3] sm:$0xff] }
 0x65b   :  { %2940 = vrsqrt.f32 %v721_v51 }
 0x665   :  { %v2941_v53 = vpop.eup %2940 }
 0x666   :  { %v728_v54 = vrot.slane %v2941_v53, %v3251_v50 }
 0x668   :  { %v729_v56 = vmul.f32 %v728_v54, %v646_v41 }
 0x66a   :  { %v730_v58 = vmul.f32 %v729_v56, %v563_v55  ;;  %v1235_v55 = vld [vmem:[%s4012_s3 + $0x8] sm:$0xff] }
 0x66c   :  { %v3312_v59 = vadd.f32 %v730_v58, %v565_v57 }
 0x66e   :  { %732 = vxpose.xlu1.b32.start.end [1/1] (short) %v3312_v59, 128 }
 0x68c   :  { %2934 = vset.pattern.permute.xlu1 %v3037_v7 }
 0x6ee   :  { %v3315_v60 = vpop.trf.xlu1 }
 0x6ef   :  { %972 = vrot.lane.b32.xlu1 %v3315_v60, %s3031_s12  ;;  %780 = vrot.lane.b32.xlu0 %v3315_v60, %s3024_s24 }
 0x6f2   :  { %v3321_v61 = vpop.trf.xlu1 }
 0x6f3   :  { %828 = vrot.lane.b32.xlu0 %v3315_v60, %s3032_s13 }
 0x6f6   :  { %v3325_v62 = vpop.trf.xlu1 }
 0x6f7   :  { %876 = vrot.lane.b32.xlu0 %v3315_v60, %s3033_s14 }
 0x6fa   :  { %v3329_v63 = vpop.trf.xlu1 }
 0x6fb   :  { %924 = vrot.lane.b32.xlu0 %v3315_v60, %s3034_s0  ;;  %1074 = vrot.lane.b32.xlu1 %v3329_v63, %s3035_s15 }
 0x6fe   :  { %v3335_v1 = vpop.trf.xlu1 }
 0x6ff   :  { %1020 = vrot.lane.b32.xlu0 %v3315_v60, %s3036_s16 }
 0x702   :  { %v3339_v2 = vpop.trf.xlu1 }
 0x703   :  { %1068 = vrot.lane.b32.xlu0 %v3315_v60, %s3035_s15  ;;  %934 = vrot.lane.b32.xlu1 %v3339_v2, %s3034_s0 }
 0x706   :  { %v3349_v3 = vpop.trf.xlu1 }
 0x707   :  { %782 = vrot.lane.b32.xlu0 %v3321_v61, %s3024_s24  ;;  %982 = vrot.lane.b32.xlu1 %v3339_v2, %s3031_s12 }
 0x70a   :  { %v3359_v5 = vpop.trf.xlu1 }
 0x70b   :  { %830 = vrot.lane.b32.xlu0 %v3321_v61, %s3032_s13  ;;  %1030 = vrot.lane.b32.xlu1 %v3339_v2, %s3036_s16 }
 0x70e   :  { %v3381_v8 = vpop.trf.xlu1 }
 0x70f   :  { %878 = vrot.lane.b32.xlu0 %v3321_v61, %s3033_s14  ;;  %1078 = vrot.lane.b32.xlu1 %v3339_v2, %s3035_s15 }
 0x712   :  { %v3391_v9 = vpop.trf.xlu1 }
 0x713   :  { %926 = vrot.lane.b32.xlu0 %v3321_v61, %s3034_s0  ;;  %794 = vrot.lane.b32.xlu1 %v3359_v5, %s3024_s24 }
 0x716   :  { %v3413_v12 = vpop.trf.xlu1 }
 0x717   :  { %974 = vrot.lane.b32.xlu0 %v3321_v61, %s3031_s12  ;;  %842 = vrot.lane.b32.xlu1 %v3359_v5, %s3032_s13 }
 0x71a   :  { %v3423_v13 = vpop.trf.xlu1 }
 0x71b   :  { %1022 = vrot.lane.b32.xlu0 %v3321_v61, %s3036_s16  ;;  %890 = vrot.lane.b32.xlu1 %v3359_v5, %s3033_s14 }
 0x71e   :  { %v3449_v16 = vpop.trf.xlu1 }
 0x71f   :  { %1070 = vrot.lane.b32.xlu0 %v3321_v61, %s3035_s15  ;;  %938 = vrot.lane.b32.xlu1 %v3359_v5, %s3034_s0 }
 0x722   :  { %v3455_v19 = vpop.trf.xlu1 }
 0x723   :  { %784 = vrot.lane.b32.xlu0 %v3325_v62, %s3024_s24  ;;  %986 = vrot.lane.b32.xlu1 %v3359_v5, %s3031_s12 }
 0x726   :  { %v3469_v23 = vpop.trf.xlu1 }
 0x727   :  { %832 = vrot.lane.b32.xlu0 %v3325_v62, %s3032_s13  ;;  %1034 = vrot.lane.b32.xlu1 %v3359_v5, %s3036_s16 }
 0x72a   :  { %v3479_v26 = vpop.trf.xlu1 }
 0x72b   :  { %880 = vrot.lane.b32.xlu0 %v3325_v62, %s3033_s14  ;;  %1082 = vrot.lane.b32.xlu1 %v3359_v5, %s3035_s15 }
 0x72f   :  { %928 = vrot.lane.b32.xlu0 %v3325_v62, %s3034_s0  ;;  %798 = vrot.lane.b32.xlu1 %v3391_v9, %s3024_s24 }
 0x733   :  { %976 = vrot.lane.b32.xlu0 %v3325_v62, %s3031_s12  ;;  %846 = vrot.lane.b32.xlu1 %v3391_v9, %s3032_s13 }
 0x737   :  { %1024 = vrot.lane.b32.xlu0 %v3325_v62, %s3036_s16  ;;  %894 = vrot.lane.b32.xlu1 %v3391_v9, %s3033_s14 }
 0x73b   :  { %1072 = vrot.lane.b32.xlu0 %v3325_v62, %s3035_s15  ;;  %942 = vrot.lane.b32.xlu1 %v3391_v9, %s3034_s0 }
 0x73f   :  { %786 = vrot.lane.b32.xlu0 %v3329_v63, %s3024_s24  ;;  %990 = vrot.lane.b32.xlu1 %v3391_v9, %s3031_s12 }
 0x743   :  { %834 = vrot.lane.b32.xlu0 %v3329_v63, %s3032_s13  ;;  %1038 = vrot.lane.b32.xlu1 %v3391_v9, %s3036_s16 }
 0x747   :  { %882 = vrot.lane.b32.xlu0 %v3329_v63, %s3033_s14  ;;  %1086 = vrot.lane.b32.xlu1 %v3391_v9, %s3035_s15 }
 0x74b   :  { %930 = vrot.lane.b32.xlu0 %v3329_v63, %s3034_s0  ;;  %802 = vrot.lane.b32.xlu1 %v3423_v13, %s3024_s24 }
 0x74f   :  { %978 = vrot.lane.b32.xlu0 %v3329_v63, %s3031_s12  ;;  %850 = vrot.lane.b32.xlu1 %v3423_v13, %s3032_s13 }
 0x753   :  { %1026 = vrot.lane.b32.xlu0 %v3329_v63, %s3036_s16  ;;  %898 = vrot.lane.b32.xlu1 %v3423_v13, %s3033_s14 }
 0x757   :  { %788 = vrot.lane.b32.xlu0 %v3335_v1, %s3024_s24  ;;  %946 = vrot.lane.b32.xlu1 %v3423_v13, %s3034_s0 }
 0x75b   :  { %836 = vrot.lane.b32.xlu0 %v3335_v1, %s3032_s13  ;;  %994 = vrot.lane.b32.xlu1 %v3423_v13, %s3031_s12 }
 0x75f   :  { %884 = vrot.lane.b32.xlu0 %v3335_v1, %s3033_s14  ;;  %1042 = vrot.lane.b32.xlu1 %v3423_v13, %s3036_s16 }
 0x761   :  { %v781_v17 = vpop.permute.xlu0 %780  ;;  %v973_v31 = vpop.permute.xlu1 %972 }
 0x762   :  { %v1116_v36 = vsel %vm80_vm1, %v3315_v60, %v781_v17 }
 0x763   :  { %932 = vrot.lane.b32.xlu0 %v3335_v1, %s3034_s0  ;;  %1090 = vrot.lane.b32.xlu1 %v3423_v13, %s3035_s15 }
 0x765   :  { %v829_v18 = vpop.permute.xlu0 %828 }
 0x766   :  { %v1133_v39 = vsel %vm1132_vm2, %v1116_v36, %v829_v18 }
 0x767   :  { %980 = vrot.lane.b32.xlu0 %v3335_v1, %s3031_s12  ;;  %806 = vrot.lane.b32.xlu1 %v3455_v19, %s3024_s24 }
 0x769   :  { %v877_v15 = vpop.permute.xlu0 %876 }
 0x76a   :  { %v1150_v41 = vsel %vm1149_vm3, %v1133_v39, %v877_v15 }
 0x76b   :  { %1028 = vrot.lane.b32.xlu0 %v3335_v1, %s3036_s16  ;;  %854 = vrot.lane.b32.xlu1 %v3455_v19, %s3032_s13 }
 0x76d   :  { %v925_v20 = vpop.permute.xlu0 %924  ;;  %v3489_v33 = vpop.permute.xlu1 %1074 }
 0x76e   :  { %v1167_v42 = vsel %vm1166_vm4, %v1150_v41, %v925_v20 }
 0x76f   :  { %1076 = vrot.lane.b32.xlu0 %v3335_v1, %s3035_s15  ;;  %902 = vrot.lane.b32.xlu1 %v3455_v19, %s3033_s14  ;;  %v1184_v46 = vsel %vm1183_vm5, %v1167_v42, %v973_v31 }
 0x771   :  { %v1021_v22 = vpop.permute.xlu0 %1020 }
 0x772   :  { %v1201_v49 = vsel %vm1200_vm6, %v1184_v46, %v1021_v22 }
 0x773   :  { %790 = vrot.lane.b32.xlu0 %v3339_v2, %s3024_s24  ;;  %950 = vrot.lane.b32.xlu1 %v3455_v19, %s3034_s0 }
 0x775   :  { %v1069_v25 = vpop.permute.xlu0 %1068  ;;  %v3501_v37 = vpop.permute.xlu1 %934 }
 0x776   :  { %v1218_v53 = vsel %vm1217_vm7, %v1201_v49, %v1069_v25 }
 0x777   :  { %838 = vrot.lane.b32.xlu0 %v3339_v2, %s3032_s13  ;;  %998 = vrot.lane.b32.xlu1 %v3455_v19, %s3031_s12  ;;  %v1250_v60 = vmul.f32 %v1234_v52, %v1218_v53 }
 0x779   :  { %v783_v28 = vpop.permute.xlu0 %782  ;;  %v3514_v47 = vpop.permute.xlu1 %982 }
 0x77a   :  { %v1117_v43 = vsel %vm80_vm1, %v3321_v61, %v783_v28 }
 0x77b   :  { %886 = vrot.lane.b32.xlu0 %v3339_v2, %s3033_s14  ;;  %1046 = vrot.lane.b32.xlu1 %v3455_v19, %s3036_s16 }
 0x77d   :  { %v831_v29 = vpop.permute.xlu0 %830  ;;  %v3537_v7 = vpop.permute.xlu1 %1030 }
 0x77e   :  { %v1134_v44 = vsel %vm1132_vm2, %v1117_v43, %v831_v29 }
 0x77f   :  { %792 = vrot.lane.b32.xlu0 %v3349_v3, %s3024_s24  ;;  %1094 = vrot.lane.b32.xlu1 %v3455_v19, %s3035_s15 }
 0x781   :  { %v879_v32 = vpop.permute.xlu0 %878  ;;  %v3544_v20 = vpop.permute.xlu1 %1078 }
 0x782   :  { %v1151_v48 = vsel %vm1149_vm3, %v1134_v44, %v879_v32 }
 0x783   :  { %840 = vrot.lane.b32.xlu0 %v3349_v3, %s3032_s13  ;;  %1096 = vrot.lane.b32.xlu1 %v3469_v23, %s3035_s15 }
 0x785   :  { %v927_v34 = vpop.permute.xlu0 %926  ;;  %v3554_v25 = vpop.permute.xlu1 %794 }
 0x786   :  { %v1168_v51 = vsel %vm1166_vm4, %v1151_v48, %v927_v34 }
 0x787   :  { %888 = vrot.lane.b32.xlu0 %v3349_v3, %s3033_s14  ;;  %810 = vrot.lane.b32.xlu1 %v3479_v26, %s3024_s24 }
 0x789   :  { %v975_v40 = vpop.permute.xlu0 %974  ;;  %v3559_v31 = vpop.permute.xlu1 %842 }
 0x78a   :  { %v1185_v54 = vsel %vm1183_vm5, %v1168_v51, %v975_v40 }
 0x78b   :  { %936 = vrot.lane.b32.xlu0 %v3349_v3, %s3034_s0  ;;  %858 = vrot.lane.b32.xlu1 %v3479_v26, %s3032_s13 }
 0x78d   :  { %v1023_v45 = vpop.permute.xlu0 %1022  ;;  %v3565_v34 = vpop.permute.xlu1 %890 }
 0x78e   :  { %v1202_v56 = vsel %vm1200_vm6, %v1185_v54, %v1023_v45 }
 0x78f   :  { %984 = vrot.lane.b32.xlu0 %v3349_v3, %s3031_s12  ;;  %906 = vrot.lane.b32.xlu1 %v3479_v26, %s3033_s14 }
 0x791   :  { %v1071_v57 = vpop.permute.xlu0 %1070  ;;  %v3569_v39 = vpop.permute.xlu1 %938 }
 0x792   :  { %v1219_v58 = vsel %vm1217_vm7, %v1202_v56, %v1071_v57 }
 0x793   :  { %v1251_v61 = vmul.f32 %v1235_v55, %v1219_v58  ;;  %1032 = vrot.lane.b32.xlu0 %v3349_v3, %s3036_s16  ;;  %954 = vrot.lane.b32.xlu1 %v3479_v26, %s3034_s0 }
 0x795   :  { %v2814_v17 = vpack.c.bf16 %v1251_v61, %v1250_v60  ;;  %v785_v18 = vpop.permute.xlu0 %784  ;;  %v3575_v41 = vpop.permute.xlu1 %986  ;;  %v1237_v61 = vld [vmem:[%s4012_s3 + $0x18] sm:$0xff] }
 0x796   :  { %v1118_v45 = vsel %vm80_vm1, %v3325_v62, %v785_v18 }
 0x797   :  { %1080 = vrot.lane.b32.xlu0 %v3349_v3, %s3035_s15  ;;  %1002 = vrot.lane.b32.xlu1 %v3479_v26, %s3031_s12 }
 0x798   :  { %2815 = vmatpush3.bf16.msra.mxu0 %v2814_v17 }
 0x799   :  { %v833_v15 = vpop.permute.xlu0 %832  ;;  %2816 = vmatprep.subr.bf16.mxu0 %v3029_v6  ;;  %v3579_v44 = vpop.permute.xlu1 %1034 }
 0x79a   :  { %v1135_v46 = vsel %vm1132_vm2, %v1118_v45, %v833_v15 }
 0x79b   :  { %796 = vrot.lane.b32.xlu0 %v3381_v8, %s3024_s24  ;;  %1050 = vrot.lane.b32.xlu1 %v3479_v26, %s3036_s16 }
 0x79d   :  { %v881_v22 = vpop.permute.xlu0 %880  ;;  %v3595_v62 = vpop.permute.xlu1 %1082 }
 0x79e   :  { %v1152_v48 = vsel %vm1149_vm3, %v1135_v46, %v881_v22 }
 0x79f   :  { %844 = vrot.lane.b32.xlu0 %v3381_v8, %s3032_s13  ;;  %1098 = vrot.lane.b32.xlu1 %v3479_v26, %s3035_s15 }
 0x7a1   :  { %v929_v28 = vpop.permute.xlu0 %928 }
 0x7a2   :  { %v1169_v52 = vsel %vm1166_vm4, %v1152_v48, %v929_v28 }
 0x7a3   :  { %892 = vrot.lane.b32.xlu0 %v3381_v8, %s3033_s14  ;;  %1433 = vperm.xlu1 %2934, %v3132_v4  }
 0x7a5   :  { %v977_v29 = vpop.permute.xlu0 %976 }
 0x7a6   :  { %v1186_v54 = vsel %vm1183_vm5, %v1169_v52, %v977_v29 }
 0x7a7   :  { %940 = vrot.lane.b32.xlu0 %v3381_v8, %s3034_s0 }
 0x7a9   :  { %v1025_v32 = vpop.permute.xlu0 %1024 }
 0x7aa   :  { %v1203_v56 = vsel %vm1200_vm6, %v1186_v54, %v1025_v32  ;;  %v3612_v32 = vpop.permute.xlu1 %798 }
 0x7ab   :  { %988 = vrot.lane.b32.xlu0 %v3381_v8, %s3031_s12 }
 0x7ad   :  { %v1073_v36 = vpop.permute.xlu0 %1072 }
 0x7ae   :  { %v1220_v58 = vsel %vm1217_vm7, %v1203_v56, %v1073_v36 }
 0x7af   :  { %1036 = vrot.lane.b32.xlu0 %v3381_v8, %s3036_s16 }
 0x7b1   :  { %v787_v38 = vpop.permute.xlu0 %786 }
 0x7b2   :  { %v1119_v49 = vsel %vm80_vm1, %v3329_v63, %v787_v38  ;;  %v1236_v63 = vld [vmem:[%s4012_s3 + $0x10] sm:$0xff] }
 0x7b3   :  { %1084 = vrot.lane.b32.xlu0 %v3381_v8, %s3035_s15  ;;  %v1252_v22 = vmul.f32 %v1236_v63, %v1220_v58 }
 0x7b5   :  { %v835_v40 = vpop.permute.xlu0 %834 }
 0x7b6   :  { %v1136_v53 = vsel %vm1132_vm2, %v1119_v49, %v835_v40 }
 0x7b7   :  { %800 = vrot.lane.b32.xlu0 %v3413_v12, %s3024_s24 }
 0x7b9   :  { %v883_v42 = vpop.permute.xlu0 %882 }
 0x7ba   :  { %v1153_v55 = vsel %vm1149_vm3, %v1136_v53, %v883_v42 }
 0x7bb   :  { %848 = vrot.lane.b32.xlu0 %v3413_v12, %s3032_s13 }
 0x7bd   :  { %v931_v43 = vpop.permute.xlu0 %930 }
 0x7be   :  { %v1170_v57 = vsel %vm1166_vm4, %v1153_v55, %v931_v43 }
 0x7bf   :  { %896 = vrot.lane.b32.xlu0 %v3413_v12, %s3033_s14 }
 0x7c1   :  { %v979_v51 = vpop.permute.xlu0 %978 }
 0x7c2   :  { %v1187_v60 = vsel %vm1183_vm5, %v1170_v57, %v979_v51 }
 0x7c3   :  { %944 = vrot.lane.b32.xlu0 %v3413_v12, %s3034_s0 }
 0x7c5   :  { %v1027_v17 = vpop.permute.xlu0 %1026 }
 0x7c6   :  { %v1204_v18 = vsel %vm1200_vm6, %v1187_v60, %v1027_v17 }
 0x7c7   :  { %v1221_v15 = vsel %vm1217_vm7, %v1204_v18, %v3489_v33  ;;  %992 = vrot.lane.b32.xlu0 %v3413_v12, %s3031_s12  ;;  %v3619_v33 = vpop.permute.xlu1 %846 }
 0x7c8   :  { %v1253_v28 = vmul.f32 %v1237_v61, %v1221_v15 }
 0x7c9   :  { %v789_v29 = vpop.permute.xlu0 %788 }
 0x7ca   :  { %v2817_v36 = vpack.c.bf16 %v1253_v28, %v1252_v22  ;;  %v1120_v55 = vsel %vm80_vm1, %v3335_v1, %v789_v29 }
 0x7cb   :  { %1040 = vrot.lane.b32.xlu0 %v3413_v12, %s3036_s16  ;;  %v3623_v43 = vpop.permute.xlu1 %894 }
 0x7cc   :  { %2818 = vmatpush3.bf16.msra.mxu0 %v2817_v36  ;;  %v1239_v36 = vld [vmem:[%s4012_s3 + $0x28] sm:$0xff] }
 0x7cd   :  { %v837_v38 = vpop.permute.xlu0 %836  ;;  %2819 = vmatprep.subr.bf16.mxu0 %v3029_v6 }
 0x7ce   :  { %v1137_v56 = vsel %vm1132_vm2, %v1120_v55, %v837_v38 }
 0x7cf   :  { %1088 = vrot.lane.b32.xlu0 %v3413_v12, %s3035_s15  ;;  %v3629_v46 = vpop.permute.xlu1 %942 }
 0x7d1   :  { %v885_v40 = vpop.permute.xlu0 %884 }
 0x7d2   :  { %v1154_v57 = vsel %vm1149_vm3, %v1137_v56, %v885_v40  ;;  %v1123_v56 = vsel %vm80_vm1, %v3359_v5, %v3554_v25 }
 0x7d3   :  { %804 = vrot.lane.b32.xlu0 %v3449_v16, %s3024_s24  ;;  %v3633_v51 = vpop.permute.xlu1 %990 }
 0x7d5   :  { %v933_v42 = vpop.permute.xlu0 %932 }
 0x7d6   :  { %v1171_v58 = vsel %vm1166_vm4, %v1154_v57, %v933_v42  ;;  %v1140_v57 = vsel %vm1132_vm2, %v1123_v56, %v3559_v31 }
 0x7d7   :  { %852 = vrot.lane.b32.xlu0 %v3449_v16, %s3032_s13  ;;  %v3639_v53 = vpop.permute.xlu1 %1038 }
 0x7d9   :  { %v981_v45 = vpop.permute.xlu0 %980 }
 0x7da   :  { %v1188_v18 = vsel %vm1183_vm5, %v1171_v58, %v981_v45 }
 0x7db   :  { %900 = vrot.lane.b32.xlu0 %v3449_v16, %s3033_s14  ;;  %v3651_v17 = vpop.permute.xlu1 %1086 }
 0x7dd   :  { %v1029_v48 = vpop.permute.xlu0 %1028 }
 0x7de   :  { %v1205_v15 = vsel %vm1200_vm6, %v1188_v18, %v1029_v48 }
 0x7df   :  { %948 = vrot.lane.b32.xlu0 %v3449_v16, %s3034_s0  ;;  %v3675_v48 = vpop.permute.xlu1 %802 }
 0x7e1   :  { %v1077_v49 = vpop.permute.xlu0 %1076 }
 0x7e2   :  { %v1222_v28 = vsel %vm1217_vm7, %v1205_v15, %v1077_v49  ;;  %v1240_v15 = vld [vmem:[%s4012_s3 + $0x30] sm:$0xff] }
 0x7e3   :  { %996 = vrot.lane.b32.xlu0 %v3449_v16, %s3031_s12 }
 0x7e5   :  { %v791_v52 = vpop.permute.xlu0 %790 }
 0x7e6   :  { %v1121_v63 = vsel %vm80_vm1, %v3339_v2, %v791_v52  ;;  %v1238_v2 = vld [vmem:[%s4012_s3 + $0x20] sm:$0xff]  ;;  %v3680_v52 = vpop.permute.xlu1 %850 }
 0x7e7   :  { %1044 = vrot.lane.b32.xlu0 %v3449_v16, %s3036_s16  ;;  %v1254_v42 = vmul.f32 %v1238_v2, %v1222_v28 }
 0x7e9   :  { %v839_v54 = vpop.permute.xlu0 %838 }
 0x7ea   :  { %v1138_v60 = vsel %vm1132_vm2, %v1121_v63, %v839_v54  ;;  %v3686_v54 = vpop.permute.xlu1 %898  ;;  %v1157_v63 = vsel %vm1149_vm3, %v1140_v57, %v3565_v34 }
 0x7eb   :  { %1092 = vrot.lane.b32.xlu0 %v3449_v16, %s3035_s15 }
 0x7ed   :  { %v887_v61 = vpop.permute.xlu0 %886 }
 0x7ee   :  { %v1155_v1 = vsel %vm1149_vm3, %v1138_v60, %v887_v61  ;;  %v1174_v60 = vsel %vm1166_vm4, %v1157_v63, %v3569_v39  ;;  %v3704_v25 = vpop.permute.xlu1 %946 }
 0x7ef   :  { %v1172_v22 = vsel %vm1166_vm4, %v1155_v1, %v3501_v37  ;;  %808 = vrot.lane.b32.xlu0 %v3469_v23, %s3024_s24  ;;  %v1191_v5 = vsel %vm1183_vm5, %v1174_v60, %v3575_v41 }
 0x7f0   :  { %v1189_v29 = vsel %vm1183_vm5, %v1172_v22, %v3514_v47  ;;  %v1208_v1 = vsel %vm1200_vm6, %v1191_v5, %v3579_v44 }
 0x7f1   :  { %v1206_v38 = vsel %vm1200_vm6, %v1189_v29, %v3537_v7  ;;  %v793_v37 = vpop.permute.xlu0 %792  ;;  %v1225_v39 = vsel %vm1217_vm7, %v1208_v1, %v3595_v62 }
 0x7f2   :  { %v1223_v40 = vsel %vm1217_vm7, %v1206_v38, %v3544_v20  ;;  %v1122_v58 = vsel %vm80_vm1, %v3349_v3, %v793_v37  ;;  %v1241_v3 = vld [vmem:[%s4012_s3 + $0x38] sm:$0xff]  ;;  %v995_v29 = vpop.permute.xlu1 %994 }
 0x7f3   :  { %856 = vrot.lane.b32.xlu0 %v3469_v23, %s3032_s13  ;;  %v1255_v45 = vmul.f32 %v1239_v36, %v1223_v40  ;;  %v1257_v28 = vmul.f32 %v1241_v3, %v1225_v39 }
 0x7f5   :  { %v841_v49 = vpop.permute.xlu0 %840  ;;  %v2820_v47 = vpack.c.bf16 %v1255_v45, %v1254_v42 }
 0x7f6   :  { %v1139_v61 = vsel %vm1132_vm2, %v1122_v58, %v841_v49  ;;  %v1043_v37 = vpop.permute.xlu1 %1042 }
 0x7f7   :  { %904 = vrot.lane.b32.xlu0 %v3469_v23, %s3033_s14  ;;  %2821 = vmatpush3.bf16.msra.mxu0 %v2820_v47  ;;  %v1125_v47 = vsel %vm80_vm1, %v3391_v9, %v3612_v32  ;;  %s3040_s14 = smov 127  }
 0x7f8   :  { %2822 = vmatprep.subr.bf16.mxu0 %v3029_v6 }
 0x7f9   :  { %v889_v7 = vpop.permute.xlu0 %888 }
 0x7fa   :  { %v1156_v31 = vsel %vm1149_vm3, %v1139_v61, %v889_v7  ;;  %v1091_v42 = vpop.permute.xlu1 %1090 }
 0x7fb   :  { %952 = vrot.lane.b32.xlu0 %v3469_v23, %s3034_s0 }
 0x7fd   :  { %v937_v20 = vpop.permute.xlu0 %936 }
 0x7fe   :  { %v1173_v34 = vsel %vm1166_vm4, %v1156_v31, %v937_v20  ;;  %v3726_v7 = vpop.permute.xlu1 %806  ;;  %v1142_v20 = vsel %vm1132_vm2, %v1125_v47, %v3619_v33 }
 0x7ff   :  { %1000 = vrot.lane.b32.xlu0 %v3469_v23, %s3031_s12 }
 0x801   :  { %v985_v55 = vpop.permute.xlu0 %984 }
 0x802   :  { %v1190_v41 = vsel %vm1183_vm5, %v1173_v34, %v985_v55  ;;  %v1159_v55 = vsel %vm1149_vm3, %v1142_v20, %v3623_v43 }
 0x803   :  { %1048 = vrot.lane.b32.xlu0 %v3469_v23, %s3036_s16  ;;  %v1176_v57 = vsel %vm1166_vm4, %v1159_v55, %v3629_v46  ;;  %v855_v46 = vpop.permute.xlu1 %854 }
 0x804   :  { %v1193_v9 = vsel %vm1183_vm5, %v1176_v57, %v3633_v51  ;;  %v1242_v51 = vld [vmem:[%s4012_s3 + $0x40] sm:$0xff] }
 0x805   :  { %v1033_v18 = vpop.permute.xlu0 %1032  ;;  %v1210_v33 = vsel %vm1200_vm6, %v1193_v9, %v3639_v53 }
 0x806   :  { %v1207_v22 = vsel %vm1200_vm6, %v1190_v41, %v1033_v18  ;;  %v1227_v43 = vsel %vm1217_vm7, %v1210_v33, %v3651_v17 }
 0x807   :  { %1267 = vperm.xlu0 %2933, %v3132_v4   ;;  %v903_v39 = vpop.permute.xlu1 %902 }
 0x809   :  { %v1081_v44 = vpop.permute.xlu0 %1080 }
 0x80a   :  { %v1224_v2 = vsel %vm1217_vm7, %v1207_v22, %v1081_v44 }
 0x80b   :  { %v1256_v4 = vmul.f32 %v1240_v15, %v1224_v2  ;;  %v951_v41 = vpop.permute.xlu1 %950 }
 0x80d   :  { %v2823_v36 = vpack.c.bf16 %v1257_v28, %v1256_v4  ;;  %v797_v38 = vpop.permute.xlu0 %796  ;;  %v1127_v28 = vsel %vm80_vm1, %v3423_v13, %v3675_v48 }
 0x80e   :  { %v1124_v56 = vsel %vm80_vm1, %v3381_v8, %v797_v38  ;;  %v1243_v8 = vld [vmem:[%s4012_s3 + $0x48] sm:$0xff]  ;;  %v1144_v4 = vsel %vm1132_vm2, %v1127_v28, %v3680_v52 }
 0x80f   :  { %2824 = vmatpush3.bf16.msra.mxu0 %v2823_v36  ;;  %v1259_v31 = vmul.f32 %v1243_v8, %v1227_v43  ;;  %v999_v44 = vpop.permute.xlu1 %998  ;;  %v1161_v36 = vsel %vm1149_vm3, %v1144_v4, %v3686_v54  ;;  %v1245_v54 = vld [vmem:[%s4012_s3 + $0x58] sm:$0xff] }
 0x810   :  { %2825 = vmatprep.subr.bf16.mxu0 %v3029_v6 }
 0x811   :  { %v845_v62 = vpop.permute.xlu0 %844 }
 0x812   :  { %v1141_v63 = vsel %vm1132_vm2, %v1124_v56, %v845_v62 }
 0x813   :  { %v1047_v38 = vpop.permute.xlu1 %1046 }
 0x815   :  { %v893_v40 = vpop.permute.xlu0 %892 }
 0x816   :  { %v1158_v32 = vsel %vm1149_vm3, %v1141_v63, %v893_v40  ;;  %v1178_v40 = vsel %vm1166_vm4, %v1161_v36, %v3704_v25  ;;  %v1244_v25 = vld [vmem:[%s4012_s3 + $0x50] sm:$0xff] }
 0x817   :  { %v1195_v47 = vsel %vm1183_vm5, %v1178_v40, %v995_v29  ;;  %v1095_v56 = vpop.permute.xlu1 %1094 }
 0x818   :  { %v1212_v48 = vsel %vm1200_vm6, %v1195_v47, %v1043_v37 }
 0x819   :  { %v941_v45 = vpop.permute.xlu0 %940 }
 0x81a   :  { %v1175_v60 = vsel %vm1166_vm4, %v1158_v32, %v941_v45 }
 0x81b   :  { %v1097_v32 = vpop.permute.xlu1 %1096 }
 0x81d   :  { %v989_v49 = vpop.permute.xlu0 %988 }
 0x81e   :  { %v1192_v61 = vsel %vm1183_vm5, %v1175_v60, %v989_v49 }
 0x81f   :  { %v811_v60 = vpop.permute.xlu1 %810 }
 0x821   :  { %v1037_v58 = vpop.permute.xlu0 %1036 }
 0x822   :  { %v1209_v18 = vsel %vm1200_vm6, %v1192_v61, %v1037_v58 }
 0x823   :  { %v859_v43 = vpop.permute.xlu1 %858 }
 0x825   :  { %v1085_v5 = vpop.permute.xlu0 %1084 }
 0x826   :  { %v1226_v53 = vsel %vm1217_vm7, %v1209_v18, %v1085_v5 }
 0x827   :  { %v1258_v1 = vmul.f32 %v1242_v51, %v1226_v53  ;;  %v1129_v51 = vsel %vm80_vm1, %v3455_v19, %v3726_v7  ;;  %v1247_v7 = vld [vmem:[%s4012_s3 + $0x68] sm:$0xff] }
 0x828   :  { %v1146_v18 = vsel %vm1132_vm2, %v1129_v51, %v855_v46 }
 0x829   :  { %v2826_v34 = vpack.c.bf16 %v1259_v31, %v1258_v1  ;;  %v801_v3 = vpop.permute.xlu0 %800  ;;  %v1163_v5 = vsel %vm1149_vm3, %v1146_v18, %v903_v39  ;;  %v1246_v39 = vld [vmem:[%s4012_s3 + $0x60] sm:$0xff] }
 0x82a   :  { %v1126_v62 = vsel %vm80_vm1, %v3413_v12, %v801_v3  ;;  %v1229_v12 = vsel %vm1217_vm7, %v1212_v48, %v1091_v42  ;;  %v1180_v31 = vsel %vm1166_vm4, %v1163_v5, %v951_v41  ;;  %v1131_v48 = vsel %vm80_vm1, %v3479_v26, %v811_v60  ;;  %v1349_v5 = vld [vmem:[%s4014_s5 + $0x8] sm:$0xff] }
 0x82b   :  { %2827 = vmatpush3.bf16.msra.mxu0 %v2826_v34  ;;  %v1261_v57 = vmul.f32 %v1245_v54, %v1229_v12  ;;  %v1197_v3 = vsel %vm1183_vm5, %v1180_v31, %v999_v44 }
 0x82c   :  { %2828 = vmatprep.subr.bf16.mxu0 %v3029_v6 }
 0x82d   :  { %v849_v17 = vpop.permute.xlu0 %848 }
 0x82e   :  { %v1143_v45 = vsel %vm1132_vm2, %v1126_v62, %v849_v17  ;;  %v907_v17 = vpop.permute.xlu1 %906 }
 0x831   :  { %v897_v15 = vpop.permute.xlu0 %896 }
 0x832   :  { %v1160_v13 = vsel %vm1149_vm3, %v1143_v45, %v897_v15  ;;  %v955_v36 = vpop.permute.xlu1 %954 }
 0x835   :  { %v945_v22 = vpop.permute.xlu0 %944 }
 0x836   :  { %v1177_v52 = vsel %vm1166_vm4, %v1160_v13, %v945_v22  ;;  %v1214_v22 = vsel %vm1200_vm6, %v1197_v3, %v1047_v38  ;;  %v1003_v45 = vpop.permute.xlu1 %1002  ;;  %v1350_v3 = vld [vmem:[%s4014_s5 + $0x10] sm:$0xff] }
 0x839   :  { %v993_v2 = vpop.permute.xlu0 %992 }
 0x83a   :  { %v1194_v20 = vsel %vm1183_vm5, %v1177_v52, %v993_v2  ;;  %v1051_v47 = vpop.permute.xlu1 %1050  ;;  %v1148_v52 = vsel %vm1132_vm2, %v1131_v48, %v859_v43 }
 0x83b   :  { %v1165_v54 = vsel %vm1149_vm3, %v1148_v52, %v907_v17  ;;  %v1351_v17 = vld [vmem:[%s4014_s5 + $0x18] sm:$0xff] }
 0x83d   :  { %v1041_v49 = vpop.permute.xlu0 %1040 }
 0x83e   :  { %v1211_v29 = vsel %vm1200_vm6, %v1194_v20, %v1041_v49 }
 0x841   :  { %v1089_v55 = vpop.permute.xlu0 %1088 }
 0x842   :  { %v1228_v37 = vsel %vm1217_vm7, %v1211_v29, %v1089_v55  ;;  %v1099_v29 = vpop.permute.xlu1 %1098 }
 0x843   :  { %v1260_v63 = vmul.f32 %v1244_v25, %v1228_v37  ;;  %v1182_v25 = vsel %vm1166_vm4, %v1165_v54, %v955_v36  ;;  %v1437_v36 = vld [vmem:[%s4013_s4] sm:$0xff] }
 0x844   :  { %v1441_v54 = vld [vmem:[%s4013_s4 + $0x20] sm:$0xff] }
 0x845   :  { %v2829_v58 = vpack.c.bf16 %v1261_v57, %v1260_v63  ;;  %v805_v9 = vpop.permute.xlu0 %804  ;;  %v1249_v63 = vld [vmem:[%s4012_s3 + $0x78] sm:$0xff] }
 0x846   :  { %v1128_v53 = vsel %vm80_vm1, %v3449_v16, %v805_v9  ;;  %v1231_v16 = vsel %vm1217_vm7, %v1214_v22, %v1095_v56  ;;  %v1199_v56 = vsel %vm1183_vm5, %v1182_v25, %v1003_v45  ;;  %v1248_v9 = vld [vmem:[%s4012_s3 + $0x70] sm:$0xff]  ;;  %v1352_v22 = vld [vmem:[%s4014_s5 + $0x20] sm:$0xff]  ;;  %s2191_s3 = sshll.u32 %s3042_s27, 4  ;;  %s2192_s3 = int_to_ptr.vmem [resolvable:$true] %s2191_s3 }
 0x847   :  { %2830 = vmatpush3.bf16.msra.mxu0 %v2829_v58  ;;  %v1263_v28 = vmul.f32 %v1247_v7, %v1231_v16  ;;  %v1216_v57 = vsel %vm1200_vm6, %v1199_v56, %v1051_v47  ;;  %v1354_v16 = vld [vmem:[%s4014_s5 + $0x30] sm:$0xff]  ;;  %v1444_v56 = vld [vmem:[%s4013_s4 + $0x38] sm:$0xff]  ;;  %s2972_s28 = scalar_lea.vmem %s2192_s3, 128  ;;  %p2977_p9 = scmp.lt.s32.totalorder %s2192_s3, %s2192_s3 }
 0x848   :  { %2831 = vmatprep.subr.bf16.mxu0 %v3029_v6  ;;  %v1439_v45 = vld [vmem:[%s4013_s4 + $0x10] sm:$0xff]  ;;  %p2973_p8 = scmp.ne.s32.totalorder %s2192_s3, %s2972_s28  ;;  %p2978_p10 = scmp.lt.s32.totalorder %s2972_s28, %s2972_s28 }
 0x849   :  { %v853_v42 = vpop.permute.xlu0 %852 }
 0x84a   :  { %v1145_v1 = vsel %vm1132_vm2, %v1128_v53, %v853_v42  ;;  %p2979_p11 = por %p2978_p10, %p2977_p9 }
 0x84c   :  { %p2980_p12 = pnand %p2979_p11, %p2973_p8 }
 0x84d   :  { %v901_v33 = vpop.permute.xlu0 %900 }
 0x84e   :  { %v1162_v15 = vsel %vm1149_vm3, %v1145_v1, %v901_v33 }
 0x851   :  { %v949_v8 = vpop.permute.xlu0 %948 }
 0x852   :  { %v1179_v19 = vsel %vm1166_vm4, %v1162_v15, %v949_v8  ;;  %v2841_v15 = vpack.c.bf16 %v1351_v17, %v1350_v3 }
 0x855   :  { %v997_v61 = vpop.permute.xlu0 %996 }
 0x856   :  { %v1196_v46 = vsel %vm1183_vm5, %v1179_v19, %v997_v61  ;;  %v1353_v19 = vld [vmem:[%s4014_s5 + $0x28] sm:$0xff] }
 0x857   :  { %v2844_v7 = vpack.c.bf16 %v1353_v19, %v1352_v22  ;;  %v1529_v19 = vld [vmem:[#allocation2 + $0x28] sm:$0xff] }
 0x859   :  { %v1045_v34 = vpop.permute.xlu0 %1044 }
 0x85a   :  { %v1213_v41 = vsel %vm1200_vm6, %v1196_v46, %v1045_v34  ;;  %v1355_v46 = vld [vmem:[%s4014_s5 + $0x38] sm:$0xff] }
 0x85d   :  { %v1093_v44 = vpop.permute.xlu0 %1092 }
 0x85e   :  { %v1230_v2 = vsel %vm1217_vm7, %v1213_v41, %v1093_v44 }
 0x85f   :  { %v1262_v4 = vmul.f32 %v1246_v39, %v1230_v2  ;;  %v2847_v39 = vpack.c.bf16 %v1355_v46, %v1354_v16 }
 0x861   :  { %v2832_v38 = vpack.c.bf16 %v1263_v28, %v1262_v4  ;;  %v809_v62 = vpop.permute.xlu0 %808  ;;  %v1434_v28 = vpop.permute.xlu1 %1433 }
 0x862   :  { %v1130_v12 = vsel %vm80_vm1, %v3469_v23, %v809_v62  ;;  %v1233_v23 = vsel %vm1217_vm7, %v1216_v57, %v1099_v29  ;;  %v1436_v4 = vmul.f32 %v1434_v28, %v3312_v59  ;;  %v2214_v28 = vld [vmem:[%s4015_s6 + $0x20] sm:$0xff] }
 0x863   :  { %2833 = vmatpush3.bf16.msra.mxu0 %v2832_v38  ;;  %v1265_v8 = vmul.f32 %v1249_v63, %v1233_v23  ;;  %v1438_v38 = vld [vmem:[%s4013_s4 + $0x8] sm:$0xff] }
 0x864   :  { %2834 = vmatprep.subr.bf16.mxu0 %v3029_v6  ;;  %v1445_v62 = vmul.f32 %v1437_v36, %v1436_v4  ;;  %v1447_v48 = vmul.f32 %v1439_v45, %v1436_v4  ;;  %v1449_v25 = vmul.f32 %v1441_v54, %v1436_v4  ;;  %v3041_v54 = vmov 3  }
 0x865   :  { %v857_v40 = vpop.permute.xlu0 %856  ;;  %2937 = vset.pattern.permute.xlu0 %v3041_v54 }
 0x866   :  { %v1147_v55 = vsel %vm1132_vm2, %v1130_v12, %v857_v40  ;;  %v1446_v40 = vmul.f32 %v1438_v38, %v1436_v4  ;;  %v1442_v12 = vld [vmem:[%s4013_s4 + $0x28] sm:$0xff] }
 0x867   :  { %v1450_v29 = vmul.f32 %v1442_v12, %v1436_v4 }
 0x869   :  { %v905_v49 = vpop.permute.xlu0 %904 }
 0x86a   :  { %v1164_v37 = vsel %vm1149_vm3, %v1147_v55, %v905_v49  ;;  %v1440_v49 = vld [vmem:[%s4013_s4 + $0x18] sm:$0xff]  ;;  %v1443_v55 = vld [vmem:[%s4013_s4 + $0x30] sm:$0xff] }
 0x86b   :  { %v1448_v52 = vmul.f32 %v1440_v49, %v1436_v4  ;;  %v1451_v57 = vmul.f32 %v1443_v55, %v1436_v4 }
 0x86d   :  { %v953_v13 = vpop.permute.xlu0 %952 }
 0x86e   :  { %v1181_v26 = vsel %vm1166_vm4, %v1164_v37, %v953_v13  ;;  %v2850_v13 = vpack.c.bf16 %v1446_v40, %v1445_v62  ;;  %v2856_v37 = vpack.c.bf16 %v1450_v29, %v1449_v25  ;;  %v2218_v62 = vld [vmem:[%s4015_s6 + $0x30] sm:$0xff]  ;;  %v2222_v29 = vld [vmem:[%s4015_s6 + $0x40] sm:$0xff] }
 0x871   :  { %v1001_v20 = vpop.permute.xlu0 %1000 }
 0x872   :  { %v1198_v58 = vsel %vm1183_vm5, %v1181_v26, %v1001_v20  ;;  %v2853_v20 = vpack.c.bf16 %v1448_v52, %v1447_v48  ;;  %v1452_v26 = vmul.f32 %v1444_v56, %v1436_v4  ;;  %v2219_v4 = vld [vmem:[%s4010_s1 + $0x1] ss:$0 sm:$0xff] }
 0x874   :  { %v2859_v63 = vpack.c.bf16 %v1452_v26, %v1451_v57 }
 0x875   :  { %v1049_v42 = vpop.permute.xlu0 %1048 }
 0x876   :  { %v1215_v33 = vsel %vm1200_vm6, %v1198_v58, %v1049_v42 }
 0x877   :  { %v1232_v60 = vsel %vm1217_vm7, %v1215_v33, %v1097_v32  ;;  %v1348_v32 = vld [vmem:[%s4014_s5] sm:$0xff] }
 0x878   :  { %v1264_v43 = vmul.f32 %v1248_v9, %v1232_v60  ;;  %v2838_v53 = vpack.c.bf16 %v1349_v5, %v1348_v32 }
 0x87a   :  { %v2835_v61 = vpack.c.bf16 %v1265_v8, %v1264_v43  ;;  %2839 = vmatpush3.bf16.msra.mxu1 %v2838_v53 }
 0x87b   :  { %2840 = vmatprep.subr.bf16.mxu1 %v3029_v6 }
 0x87c   :  { %2836 = vmatpush3.bf16.msra.mxu0 %v2835_v61 }
 0x87d   :  { %2861 = vmatprep.subr.bf16.mxu0 %v3029_v6 }
 0x87e   :  { %2842 = vmatpush3.bf16.msra.mxu1 %v2841_v15  ;;  %v1527_v15 = vld [vmem:[#allocation2 + $0x20] sm:$0xff] }
 0x87f   :  { %2843 = vmatprep.subr.bf16.mxu1 %v3029_v6 }
 0x882   :  { %2845 = vmatpush3.bf16.msra.mxu1 %v2844_v7  ;;  %v3039_v7 = vmov 2  }
 0x883   :  { %2846 = vmatprep.subr.bf16.mxu1 %v3029_v6  ;;  %2935 = vset.pattern.permute.xlu1 %v3039_v7 }
 0x886   :  { %v1268_v51 = vpop.permute.xlu0 %1267  ;;  %2848 = vmatpush3.bf16.msra.mxu1 %v2847_v39  ;;  %v2215_v39 = vld [vmem:[%s4015_s6 + $0x28] sm:$0xff] }
 0x887   :  { %v1270_v18 = vmul.f32 %v1268_v51, %v3312_v59  ;;  %2849 = vmatprep.subr.bf16.mxu1 %v3029_v6 }
 0x889   :  { %2577 = vmatmul.mubr.f32.vlgmr.msra.gmra.mrb[8].mxu0 %v1270_v18 }
 0x88a   :  { %2863 = vmatpush3.bf16.msra.mxu0 %v3148_v10  ;;  %2649 = vmatprep.mubr.msk.f32.mxu0 %vm3026_vm0, %v3025_v0 }
 0x88b   :  { %2864 = vmatprep.subr.bf16.mxu0 %v3029_v6 }
 0x88e   :  { %2866 = vmatpush3.bf16.msra.mxu0 %v3154_v11 }
 0x88f   :  { %2867 = vmatprep.subr.bf16.mxu0 %v3029_v6 }
 0x892   :  { %2869 = vmatpush3.bf16.msra.mxu0 %v3164_v14 }
 0x893   :  { %2870 = vmatprep.subr.bf16.mxu0 %v3029_v6 }
 0x896   :  { %2872 = vmatpush3.bf16.msra.mxu0 %v3194_v21 }
 0x897   :  { %2873 = vmatprep.subr.bf16.mxu0 %v3029_v6 }
 0x89a   :  { %2875 = vmatpush3.bf16.msra.mxu0 %v3206_v24 }
 0x89b   :  { %2876 = vmatprep.subr.bf16.mxu0 %v3029_v6 }
 0x89e   :  { %2878 = vmatpush3.bf16.msra.mxu0 %v3218_v27 }
 0x89f   :  { %2879 = vmatprep.subr.bf16.mxu0 %v3029_v6 }
 0x8a2   :  { %2881 = vmatpush3.bf16.msra.mxu0 %v3230_v30 }
 0x8a3   :  { %2882 = vmatprep.subr.bf16.mxu0 %v3029_v6 }
 0x8a6   :  { %2884 = vmatpush3.bf16.msra.mxu0 %v3239_v35 }
 0x8a7   :  { %2687 = vmatprep.subr.mxu0 %v3025_v0 }
 0x95c   :  { %v1337_v31 = vpop.f32.mrb[8].mxu0 }
 0x95d   :  { %v2578_v1 = vpop.f32.mrb[9].mxu0  ;;  %v1342_v34 = vsel %vm1341_vm8, %v1337_v31, -inf }
 0x95e   :  { %1343 = vmax.xlane.f32.xlu0 %v1342_v34 }
 0x9eb   :  { %v1344_v41 = vpop.xlane.xlu0 %1343 }
 0x9ec   :  { %v1345_v44 = vsub.f32 %v1337_v31, %v1344_v41 }
 0x9ee   :  { %v1346_v2 = vmul.f32 1.442695, %v1345_v44  ;;  %v2949_v44 = vld [vmem:[%s4010_s1] ss:$0 sm:$0xff] }
 0x9f0   :  { %2942 = vpow2.f32 %v1346_v2 }
 0x9fa   :  { %v2943_v47 = vpop.eup %2942 }
 0x9fb   :  { %2596 = vmatmul.mubr.msk.f32.vlgmr.msra.gmra.mrb[8].mxu1 %vm1341_vm8, %v2943_v47 }
 0x9fc   :  { %2851 = vmatpush3.bf16.msra.mxu1 %v2850_v13  ;;  %2614 = vmatprep.mubr.msk.f32.mxu1 %vm3026_vm0, %v3025_v0 }
 0x9fd   :  { %2852 = vmatprep.subr.bf16.mxu1 %v3029_v6 }
 0xa00   :  { %2854 = vmatpush3.bf16.msra.mxu1 %v2853_v20 }
 0xa01   :  { %2855 = vmatprep.subr.bf16.mxu1 %v3029_v6 }
 0xa04   :  { %2857 = vmatpush3.bf16.msra.mxu1 %v2856_v37  ;;  %v2221_v37 = vld [vmem:[%s4015_s6 + $0x38] sm:$0xff] }
 0xa05   :  { %2858 = vmatprep.subr.bf16.mxu1 %v3029_v6 }
 0xa08   :  { %2860 = vmatpush3.bf16.msra.mxu1 %v2859_v63  ;;  %v2225_v63 = vld [vmem:[%s4015_s6 + $0x48] sm:$0xff] }
 0xa09   :  { %2885 = vmatprep.subr.bf16.mxu1 %v3029_v6 }
 0xace   :  { %v1425_v23 = vpop.f32.mrb[8].mxu1 }
 0xacf   :  { %2944 = vrcp.f32 %v1425_v23  ;;  %v2597_v58 = vpop.f32.mrb[9].mxu1 }
 0xad9   :  { %v2945_v9 = vpop.eup %2944 }
 0xada   :  { %v1430_v42 = vmul.f32 %v2945_v9, %v2943_v47 }
 0xadc   :  { %1431 = vst.msk [vmem:[#allocation6] sm:$0xff] %vm1341_vm8, %v1430_v42  ;;  %2615 = vmatmul.mubr.msk.f32.vlgmr.msra.gmra.mrb[10].mxu1 %vm1341_vm8, %v1430_v42 }
 0xadd   :  { %2887 = vmatpush3.bf16.msra.mxu1 %v3148_v10  ;;  %2684 = vmatprep.mubr.msk.f32.mxu1 %vm3026_vm0, %v3025_v0 }
 0xade   :  { %2888 = vmatprep.subr.bf16.mxu1 %v3029_v6 }
 0xae1   :  { %2890 = vmatpush3.bf16.msra.mxu1 %v3154_v11 }
 0xae2   :  { %2891 = vmatprep.subr.bf16.mxu1 %v3029_v6 }
 0xae5   :  { %2893 = vmatpush3.bf16.msra.mxu1 %v3164_v14 }
 0xae6   :  { %2894 = vmatprep.subr.bf16.mxu1 %v3029_v6 }
 0xae9   :  { %2896 = vmatpush3.bf16.msra.mxu1 %v3194_v21 }
 0xaea   :  { %2897 = vmatprep.subr.bf16.mxu1 %v3029_v6 }
 0xaed   :  { %2899 = vmatpush3.bf16.msra.mxu1 %v3206_v24 }
 0xaee   :  { %2900 = vmatprep.subr.bf16.mxu1 %v3029_v6 }
 0xaf1   :  { %2902 = vmatpush3.bf16.msra.mxu1 %v3218_v27 }
 0xaf2   :  { %2903 = vmatprep.subr.bf16.mxu1 %v3029_v6 }
 0xaf5   :  { %2905 = vmatpush3.bf16.msra.mxu1 %v3230_v30 }
 0xaf6   :  { %2906 = vmatprep.subr.bf16.mxu1 %v3029_v6 }
 0xaf9   :  { %2908 = vmatpush3.bf16.msra.mxu1 %v3239_v35 }
 0xafa   :  { %2692 = vmatprep.subr.mxu1 %v3025_v0 }
 0xbaf   :  { %v1522_v10 = vpop.f32.mrb[10].mxu1 }
 0xbb0   :  { %v1523_v11 = vadd.f32 %v1522_v10, %v3312_v59  ;;  %v2616_v14 = vpop.f32.mrb[11].mxu1 }
 0xbb2   :  { %v1530_v21 = vrot.slane %v1523_v11, 4 }
 0xbb4   :  { %v1531_v24 = vadd.f32 %v1530_v21, %v1523_v11 }
 0xbb6   :  { %v1532_v33 = vrot.slane %v1531_v24, 2 }
 0xbb8   :  { %v1533_v60 = vadd.f32 %v1532_v33, %v1531_v24 }
 0xbba   :  { %v1534_v8 = vrot.slane %v1533_v60, 1 }
 0xbbc   :  { %v1535_v27 = vadd.f32 %v1534_v8, %v1533_v60 }
 0xbbe   :  { %2650 = vmatmul.mubr.f32.vlgmr.msra.gmra.mrb[10].mxu0 %v1535_v27 }
 0xbbf   :  { %2689 = vmatprep.mubr.msk.f32.mxu0 %vm3026_vm0, %v3025_v0 }
 0xc91   :  { %v1602_v30 = vpop.f32.mrb[10].mxu0 }
 0xc92   :  { %v1609_v6 = vrot.slane %v1602_v30, %v3251_v50  ;;  %v2651_v35 = vpop.f32.mrb[11].mxu0 }
 0xc94   :  { %v1610_v43 = vsub.f32 %v1523_v11, %v1609_v6 }
 0xc96   :  { %v1611_v61 = vmul.f32 %v1610_v43, %v1610_v43 }
 0xc98   :  { %v1612_v51 = vrot.slane %v1611_v61, 4 }
 0xc9a   :  { %v1613_v18 = vadd.f32 %v1612_v51, %v1611_v61 }
 0xc9c   :  { %v1614_v59 = vrot.slane %v1613_v18, 2 }
 0xc9e   :  { %v1615_v32 = vadd.f32 %v1614_v59, %v1613_v18 }
 0xca0   :  { %v1616_v5 = vrot.slane %v1615_v32, 1 }
 0xca2   :  { %v1617_v53 = vadd.f32 %v1616_v5, %v1615_v32 }
 0xca4   :  { %2685 = vmatmul.mubr.f32.vlgmr.msra.gmra.mrb[12].mxu1 %v1617_v53 }
 0xca5   :  { %2694 = vmatprep.mubr.msk.f32.mxu1 %vm3026_vm0, %v3025_v0 }
 0xd77   :  { %v1684_v31 = vpop.f32.mrb[12].mxu1 }
 0xd78   :  { %v1685_v1 = vadd.f32 1e-05, %v1684_v31  ;;  %v2686_v34 = vpop.f32.mrb[13].mxu1 }
 0xd7a   :  { %2946 = vrsqrt.f32 %v1685_v1 }
 0xd84   :  { %v2947_v3 = vpop.eup %2946 }
 0xd85   :  { %v1692_v17 = vrot.slane %v2947_v3, %v3251_v50  ;;  %v2948_v50 = vld [vmem:[%s4016_s7] sm:$0xff] }
 0xd87   :  { %v1693_v22 = vmul.f32 %v1692_v17, %v1610_v43 }
 0xd89   :  { %v1694_v16 = vmul.f32 %v1693_v22, %v1527_v15 }
 0xd8b   :  { %v1695_v46 = vadd.f32 %v1694_v16, %v1529_v19 }
 0xd8d   :  { %1698 = vrot.lane.b32.xlu1 %v1695_v46, %s3028_s30  ;;  %2688 = vmatpush3.msra.mxu0 %v1695_v46 }
 0xd8e   :  { %2690 = vmatmul.mubr.msk.f32.vlgmr.msra.gmra.mrb[12].mxu0 %vm80_vm1, %v2215_v39  ;;  %2697 = vmatprep.subr.mxu0 %v3025_v0 }
 0xd8f   :  { %2699 = vmatprep.mubr.msk.f32.mxu0 %vm3026_vm0, %v3025_v0 }
 0xd91   :  { %1851 = vrot.lane.b32.xlu1 %v1695_v46, %s3040_s14 }
 0xd95   :  { %1933 = vperm.xlu1 %2935, %v2948_v50  }
 0xd99   :  { %2936 = vset.pattern.permute.xlu1 %v3041_v54 }
 0xdff   :  { %v1699_v41 = vpop.permute.xlu1 %1698 }
 0xe00   :  { %v1700_v2 = vmul.f32 %v2949_v44, %v1699_v41 }
 0xe02   :  { %2693 = vmatpush3.msra.mxu1 %v1700_v2 }
 0xe03   :  { %2695 = vmatmul.mubr.msk.f32.vlgmr.msra.gmra.mrb[14].mxu1 %vm80_vm1, %v2214_v28  ;;  %v1852_v36 = vpop.permute.xlu1 %1851  ;;  %2702 = vmatprep.subr.mxu1 %v3025_v0 }
 0xe04   :  { %v1857_v38 = vmul.f32 %v2219_v4, %v1852_v36  ;;  %2704 = vmatprep.mubr.msk.f32.mxu1 %vm3026_vm0, %v3025_v0 }
 0xe06   :  { %2698 = vmatpush3.msra.mxu0 %v1857_v38 }
 0xe07   :  { %2700 = vmatmul.mubr.msk.f32.vlgmr.msra.gmra.mrb[14].mxu0 %vm80_vm1, %v2218_v62  ;;  %2707 = vmatprep.subr.mxu0 %v3025_v0 }
 0xe08   :  { %2709 = vmatprep.mubr.msk.f32.mxu0 %vm3026_vm0, %v3025_v0 }
 0xe14   :  { %v1934_v52 = vpop.permute.xlu1 %1933 }
 0xe61   :  { %v1772_v40 = vpop.f32.mrb[12].mxu0 }
 0xe62   :  { %v2691_v45 = vpop.f32.mrb[13].mxu0 }
 0xed6   :  { %v1845_v49 = vpop.f32.mrb[14].mxu1 }
 0xed7   :  { %v1846_v47 = vadd.f32 %v1845_v49, %v1772_v40  ;;  %v2696_v13 = vpop.f32.mrb[15].mxu1 }
 0xeda   :  { %v1927_v48 = vpop.f32.mrb[14].mxu0 }
 0xedb   :  { %v1931_v12 = vadd.f32 %v1927_v48, %v1846_v47  ;;  %v2701_v20 = vpop.f32.mrb[15].mxu0 }
 0xedd   :  { %v1936_v25 = vadd.f32 %v1934_v52, %v1931_v12 }
 0xedf   :  { %1939 = vrot.lane.b32.xlu1 %v1936_v25, %s3028_s30  ;;  %2703 = vmatpush3.msra.mxu1 %v1936_v25 }
 0xee0   :  { %2705 = vmatmul.mubr.msk.f32.vlgmr.msra.gmra.mrb[16].mxu1 %vm80_vm1, %v2222_v29  ;;  %2712 = vmatprep.subr.mxu1 %v3025_v0 }
 0xee1   :  { %2714 = vmatprep.mubr.msk.f32.mxu1 %vm3026_vm0, %v3025_v0 }
 0xee3   :  { %2092 = vrot.lane.b32.xlu1 %v1936_v25, %s3040_s14 }
 0xee7   :  { %2170 = vperm.xlu1 %2936, %v2948_v50  }
 0xf51   :  { %v1940_v55 = vpop.permute.xlu1 %1939 }
 0xf52   :  { %v1941_v56 = vmul.f32 %v2949_v44, %v1940_v55 }
 0xf54   :  { %2708 = vmatpush3.msra.mxu0 %v1941_v56 }
 0xf55   :  { %v2093_v57 = vpop.permute.xlu1 %2092  ;;  %2710 = vmatmul.mubr.msk.f32.vlgmr.msra.gmra.mrb[16].mxu0 %vm80_vm1, %v2221_v37 }
 0xf56   :  { %v2094_v26 = vmul.f32 %v2219_v4, %v2093_v57 }
 0xf58   :  { %2713 = vmatpush3.msra.mxu1 %v2094_v26 }
 0xf59   :  { %2715 = vmatmul.mubr.msk.f32.vlgmr.msra.gmra.mrb[18].mxu1 %vm80_vm1, %v2225_v63 }
 0xfb3   :  { %v2013_v0 = vpop.f32.mrb[16].mxu1 }
 0xfb4   :  { %v2706_v23 = vpop.f32.mrb[17].mxu1 }
 0xfb5   :  { %2983 = shalt.err (!%p2980_p12)
}
 0xfb6   :  { %s2984_s8 = scalar_lea.hbm %s4019_s10, 128 }
 0xfb7   :  { %p2985_p13 = scmp.ne.s32.totalorder %s4019_s10, %s2984_s8  ;;  %p2988_p0 = scmp.lt.u32.totalorder %s2984_s8, %s4019_s10 }
 0xfb9   :  { %p2990_p1 = pnand %p2988_p0, %p2985_p13 }
 0xfbb   :  { %2993 = shalt.err (!%p2990_p1)
}
 0xfbc   :  { %2194 = dma.vmem_to_hbm [thread:$0]  %s2192_s3, 128, %s4019_s10, [#allocation7]   ;;  %v2171_v11 = vpop.permute.xlu1 %2170 }
 0xfbd   :  { %s3043_s14 = smov [#allocation5]  }
 0xfbe   :  { %s2181_s0 = sshll.u32 %s3043_s14, 4  ;;  %s2182_s0 = int_to_ptr.vmem [resolvable:$true] %s2181_s0 }
 0xfbf   :  { %s2994_s15 = scalar_lea.vmem %s2182_s0, 128  ;;  %p2999_p3 = scmp.lt.s32.totalorder %s2182_s0, %s2182_s0 }
 0xfc0   :  { %p2995_p2 = scmp.ne.s32.totalorder %s2182_s0, %s2994_s15  ;;  %p3000_p4 = scmp.lt.s32.totalorder %s2994_s15, %s2994_s15 }
 0xfc2   :  { %p3001_p5 = por %p3000_p4, %p2999_p3 }
 0xfc4   :  { %p3002_p6 = pnand %p3001_p5, %p2995_p2 }
0x1028   :  { %v2086_v58 = vpop.f32.mrb[16].mxu0 }
0x1029   :  { %v2087_v9 = vadd.f32 %v2086_v58, %v2013_v0  ;;  %v2711_v42 = vpop.f32.mrb[17].mxu0 }
0x102c   :  { %v2164_v10 = vpop.f32.mrb[18].mxu1 }
0x102d   :  { %v2168_v14 = vadd.f32 %v2164_v10, %v2087_v9  ;;  %v2716_v21 = vpop.f32.mrb[19].mxu1 }
0x102f   :  { %v2173_v24 = vadd.f32 %v2171_v11, %v2168_v14 }
0x1031   :  { %2174 = vst [vmem:[#allocation5] sm:$0xff] %v2173_v24 }
0x1032   :  { %3005 = shalt.err (!%p3002_p6)
}
0x1033   :  { %s3006_s17 = scalar_lea.hbm %s4018_s9, 128 }
0x1034   :  { %p3007_p7 = scmp.ne.s32.totalorder %s4018_s9, %s3006_s17  ;;  %p3010_p8 = scmp.lt.u32.totalorder %s3006_s17, %s4018_s9 }
0x1036   :  { %p3012_p9 = pnand %p3010_p8, %p3007_p7 }
0x1038   :  { %3015 = shalt.err (!%p3012_p9)
}
0x1039   :  { %2184 = dma.vmem_to_hbm [thread:$0]  %s2182_s0, 128, %s4018_s9, [#allocation4]  }
0x103a   :  { %3018 = dma.done.wait [#allocation4], 128  }
0x103b   :  { %3019 = vsyncadd [#allocation4], 4294967168 }
0x103c   :  { %3020 = dma.done.wait [#allocation7], 128  }
0x103d   :  { %3021 = vsyncadd [#allocation7], 4294967168 }
0x103e   :  { %2201 = vsyncpa [#allocation3], 1 }
0x103f   :  { %2202 = vsyncpa [#allocation4], 1 }
0x1040   :  { %2203 = vsyncpa [#allocation7], 1 }

</bundles_post_ra>
